<compile_context>
chip_gen: v7x
topology: tpu7x:2x2x1
jax: 0.10.0
libtpu: 0.0.40
codegen_flags: <defaults>
</compile_context>

<pallas_src>
import math

import jax
import jax.numpy as jnp
from jax.experimental import pallas as pl
from jax.experimental.pallas import tpu as pltpu

# ----------------------------- model hyper-params -----------------------------
HIDDEN_DIM = 32          # transformer.d_model
NUM_QUERIES = 8
NUM_CLASSES = 8
QUERY_DIM = 4
NUM_DEC_LAYERS = 6
BACKBONE_CHANNELS = 16   # backbone.num_channels
CIN_PAD = 8              # input channels (3) padded to sublane granule
HEAD_SLAB = 128          # lane-dense head output width
COORD_OFF = NUM_CLASSES  # coords live in lanes [COORD_OFF, COORD_OFF+4)


# ----------------------------- fused Pallas kernel -----------------------------
def _dab_detr_kernel(x_ref, pos_ref, pool_ref, tgt_ref, ref_ref,
                     wbb_ref, bbb_ref, wp_ref, bp_ref,
                     wdec_ref, bdec_ref,
                     w1_ref, b1_ref, w2_ref, b2_ref,
                     w3p_ref, b3p_ref, wcp_ref, bcp_ref,
                     out_ref):
    """Whole DAB-DETR (eval, no-DN) stub forward in one kernel.

    x:[N,CIN_PAD] pos:[N,D] pool:[B*Q,N] tgt:[B*Q,D] ref:[B*Q,128]
    out:[L, B*Q, 128]  (logits lanes [0,8), sigmoid coords lanes [8,12))
    """
    # ---- backbone stub 1x1 conv + input_proj + pos embed ----------------------
    feat = jnp.dot(x_ref[...], wbb_ref[...],
                   preferred_element_type=jnp.float32) + bbb_ref[...]
    feat = jnp.maximum(feat, 0.0)                                    # backbone stub
    mem = (jnp.dot(feat, wp_ref[...], preferred_element_type=jnp.float32)
           + bp_ref[...] + pos_ref[...])                             # [N, D]

    # per-batch mean pool + broadcast to every query, as one constant matmul
    pool_bq = jnp.dot(pool_ref[...], mem,
                      preferred_element_type=jnp.float32)            # [B*Q, D]

    # inverse_sigmoid(reference), eps = 1e-3 (padding lanes hold 0.5 -> contribute 0)
    r = jnp.clip(ref_ref[...], 0.0, 1.0)
    eps = 1e-3
    ref_us = jnp.log(jnp.maximum(r, eps) / jnp.maximum(1.0 - r, eps))

    lane = jax.lax.broadcasted_iota(jnp.int32, ref_us.shape, 1)
    is_coord = (lane >= COORD_OFF) & (lane < COORD_OFF + QUERY_DIM)

    # ---- decoder stub (L layers) + prediction heads, statically unrolled -------
    cur = tgt_ref[...]                                               # [B*Q, D]
    for l in range(NUM_DEC_LAYERS):
        xin = cur + pool_bq
        cur = jnp.maximum(
            jnp.dot(xin, wdec_ref[l], preferred_element_type=jnp.float32)
            + bdec_ref[l], 0.0)

        # bbox_embed: MLP(D, D, 4, num_layers=3) hidden layers (ReLU)
        h = jnp.dot(cur, w1_ref[...], preferred_element_type=jnp.float32) + b1_ref[...]
        h = jnp.maximum(h, 0.0)
        h = jnp.dot(h, w2_ref[...], preferred_element_type=jnp.float32) + b2_ref[...]
        h = jnp.maximum(h, 0.0)

        # class head + bbox final layer + inverse_sigmoid(ref), disjoint lanes
        lin = (jnp.dot(cur, wcp_ref[...], preferred_element_type=jnp.float32)
               + bcp_ref[...]
               + jnp.dot(h, w3p_ref[...], preferred_element_type=jnp.float32)
               + b3p_ref[...]
               + ref_us)
        out_ref[l, :, :] = jnp.where(
            is_coord, jax.nn.sigmoid(lin), lin).astype(out_ref.dtype)


def pallas_dab_detr(x, pos, pool_mat, tgt, ref_pad, p):
    N, Kp = x.shape
    BQ = tgt.shape[0]
    D = HIDDEN_DIM
    L = NUM_DEC_LAYERS
    f2 = lambda i: (0, 0)
    f3 = lambda i: (0, 0, 0)
    return pl.pallas_call(
        _dab_detr_kernel,
        out_shape=jax.ShapeDtypeStruct((L, BQ, HEAD_SLAB), jnp.float32),
        grid=(1,),
        in_specs=[
            pl.BlockSpec((N, Kp), f2),
            pl.BlockSpec((N, D), f2),
            pl.BlockSpec((BQ, N), f2),
            pl.BlockSpec((BQ, D), f2),
            pl.BlockSpec((BQ, HEAD_SLAB), f2),
            pl.BlockSpec((Kp, BACKBONE_CHANNELS), f2),
            pl.BlockSpec((1, BACKBONE_CHANNELS), f2),
            pl.BlockSpec((BACKBONE_CHANNELS, D), f2),
            pl.BlockSpec((1, D), f2),
            pl.BlockSpec((L, D, D), f3),
            pl.BlockSpec((L, 1, D), f3),
            pl.BlockSpec((D, D), f2), pl.BlockSpec((1, D), f2),
            pl.BlockSpec((D, D), f2), pl.BlockSpec((1, D), f2),
            pl.BlockSpec((D, HEAD_SLAB), f2), pl.BlockSpec((1, HEAD_SLAB), f2),
            pl.BlockSpec((D, HEAD_SLAB), f2), pl.BlockSpec((1, HEAD_SLAB), f2),
        ],
        out_specs=pl.BlockSpec((L, BQ, HEAD_SLAB), f3),
        compiler_params=pltpu.CompilerParams(dimension_semantics=("arbitrary",)),
    )(x, pos, pool_mat, tgt, ref_pad,
      p['backbone_w_pad'], p['backbone_b'], p['proj_w'], p['proj_b'],
      p['dec_w'], p['dec_b'],
      p['bb_w1'], p['bb_b1'], p['bb_w2'], p['bb_b2'],
      p['bb_w3_pad'], p['bb_b3_pad'], p['class_w_pad'], p['class_b_pad'])


# ----------------------------- parameter init ---------------------------------
def init_params(key):
    ks = jax.random.split(key, 16)

    def lin(k, nin, nout):
        kw, kb = jax.random.split(k)
        bound = 1.0 / math.sqrt(nin)
        w = jax.random.uniform(kw, (nin, nout), jnp.float32, -bound, bound)
        b = jax.random.uniform(kb, (nout,), jnp.float32, -bound, bound)
        return w, b

    p = {}
    # backbone stub channel projection (3 -> num_channels), 1x1 conv; K padded 3->8
    w_bb, b_bb = lin(ks[0], 3, BACKBONE_CHANNELS)
    p['backbone_w_pad'] = jnp.zeros((CIN_PAD, BACKBONE_CHANNELS), jnp.float32).at[:3].set(w_bb)
    p['backbone_b'] = b_bb.reshape(1, -1)
    # input_proj: Conv2d(num_channels, hidden_dim, kernel_size=1) as a matmul
    p['proj_w'], b_pr = lin(ks[1], BACKBONE_CHANNELS, HIDDEN_DIM)
    p['proj_b'] = b_pr.reshape(1, -1)
    # class_embed: Linear(hidden_dim, num_classes), focal-prior bias; padded into
    # the lane-dense head slab (lanes [0, NUM_CLASSES))
    w_cls, _ = lin(ks[2], HIDDEN_DIM, NUM_CLASSES)
    prior_prob = 0.01
    b_cls = jnp.full((NUM_CLASSES,), -math.log((1 - prior_prob) / prior_prob), jnp.float32)
    p['class_w_pad'] = jnp.zeros((HIDDEN_DIM, HEAD_SLAB), jnp.float32).at[:, :NUM_CLASSES].set(w_cls)
    p['class_b_pad'] = jnp.zeros((1, HEAD_SLAB), jnp.float32).at[0, :NUM_CLASSES].set(b_cls)
    # bbox_embed = MLP(hidden_dim, hidden_dim, 4, 3); last layer zero-init (as in
    # module); final layer padded into lanes [COORD_OFF, COORD_OFF+4)
    p['bb_w1'], b1 = lin(ks[3], HIDDEN_DIM, HIDDEN_DIM)
    p['bb_b1'] = b1.reshape(1, -1)
    p['bb_w2'], b2 = lin(ks[4], HIDDEN_DIM, HIDDEN_DIM)
    p['bb_b2'] = b2.reshape(1, -1)
    p['bb_w3_pad'] = jnp.zeros((HIDDEN_DIM, HEAD_SLAB), jnp.float32)   # zero-init
    p['bb_b3_pad'] = jnp.zeros((1, HEAD_SLAB), jnp.float32)
    # label_enc: Embedding(num_classes + 1, hidden_dim - 1)
    p['label_enc'] = jax.random.normal(ks[5], (NUM_CLASSES + 1, HIDDEN_DIM - 1), jnp.float32)
    # refpoint_embed: Embedding(num_queries, query_dim)
    p['refpoint'] = jax.random.normal(ks[6], (NUM_QUERIES, QUERY_DIM), jnp.float32)
    # transformer-stub decoder layers, stacked for the fused kernel
    ws, bs = [], []
    for l in range(NUM_DEC_LAYERS):
        w, b = lin(ks[7 + l], HIDDEN_DIM, HIDDEN_DIM)
        ws.append(w)
        bs.append(b.reshape(1, -1))
    p['dec_w'] = jnp.stack(ws)          # [L, D, D]
    p['dec_b'] = jnp.stack(bs)          # [L, 1, D]
    return p


def sine_pos_embed(h, w, d):
    """Deterministic sine positional embedding, channel-LAST layout [h, w, d]."""
    y = jnp.arange(h, dtype=jnp.float32)[:, None, None]
    x = jnp.arange(w, dtype=jnp.float32)[None, :, None]
    dim_t = jnp.arange(d // 4, dtype=jnp.float32)
    dim_t = 10000.0 ** (2.0 * dim_t / (d // 2))
    pos_x = jnp.broadcast_to(x / dim_t, (h, w, d // 4))
    pos_y = jnp.broadcast_to(y / dim_t, (h, w, d // 4))
    return jnp.concatenate(
        [jnp.sin(pos_x), jnp.cos(pos_x), jnp.sin(pos_y), jnp.cos(pos_y)], axis=-1)


# ----------------------------- DAB-DETR forward --------------------------------
def dab_detr_forward(params, samples, dn_args=0):
    """samples: [B, 3, H, W] NCHW (PyTorch convention). Eval (no-DN) path."""
    B, Cin, H, W = samples.shape

    # ---- backbone stand-in -----------------------------------------------------
    # TODO(synk): ResNet backbone not replicated; stand-in = stride-4 subsample +
    #             fused Pallas 1x1 conv projection + sine pos embed + pooling.
    stride = 4
    feat_in = samples[:, :, ::stride, ::stride]                       # [B, 3, h, w]
    h, w = feat_in.shape[2], feat_in.shape[3]
    hw = h * w
    N = B * hw
    # single NCHW -> NHWC transpose; channels stay on the lane axis from here on
    x = jnp.transpose(feat_in, (0, 2, 3, 1)).reshape(N, Cin)
    x = jnp.pad(x, ((0, 0), (0, CIN_PAD - Cin)))                      # K: 3 -> 8
    pos_flat = jnp.tile(sine_pos_embed(h, w, HIDDEN_DIM).reshape(hw, HIDDEN_DIM), (B, 1))
    # fused (per-batch mean pool) @ (broadcast pool to every query) matrix [B*Q, N]
    pool_mat = jnp.repeat(
        jnp.repeat(jnp.eye(B, dtype=jnp.float32), NUM_QUERIES, axis=0),
        hw, axis=1) / float(hw)
    # mask of padded pixels is all-False at these sizes (unused by the stub)

    # ---- prepare_for_dn (eval path) ---------------------------------------------
    # TODO(synk): training-time denoising (label/box noise, attn_mask, mask_dict)
    #             not implemented; this is the inference path (mask_dict=None).
    tgt_vec = jnp.concatenate(
        [jnp.tile(params['label_enc'][NUM_CLASSES][None, :], (NUM_QUERIES, 1)),
         jnp.zeros((NUM_QUERIES, 1), jnp.float32)], axis=1)           # [Q, D]
    tgt = jnp.broadcast_to(tgt_vec[None], (B, NUM_QUERIES, HIDDEN_DIM)
                           ).reshape(B * NUM_QUERIES, HIDDEN_DIM)     # [B*Q, D]
    mask_dict = None

    # reference points (shared across the stub's decoder layers)
    ref = jax.nn.sigmoid(params['refpoint'])                          # [Q, 4]
    ref_bq = jnp.broadcast_to(ref[None], (B, NUM_QUERIES, QUERY_DIM)
                              ).reshape(B * NUM_QUERIES, QUERY_DIM)   # [B*Q, 4]
    # pad reference into the slab layout; fill 0.5 so inverse_sigmoid(pad) == 0
    ref_pad = jnp.full((B * NUM_QUERIES, HEAD_SLAB), 0.5, jnp.float32
                       ).at[:, COORD_OFF:COORD_OFF + QUERY_DIM].set(ref_bq)

    # ---- transformer stand-in + prediction heads: ONE fused Pallas kernel -------
    # TODO(synk): full DAB-DETR transformer (MHSA / cross-attn / iterative box
    #             refinement) not replicated; stand-in mixes the pooled memory into
    #             the queries through per-layer linear+ReLU, heads fused per layer.
    slab = pallas_dab_detr(x, pos_flat, pool_mat, tgt, ref_pad, params)  # [L,B*Q,128]

    slab = slab.reshape(NUM_DEC_LAYERS, B, NUM_QUERIES, HEAD_SLAB)
    outputs_class = slab[..., :NUM_CLASSES]
    outputs_coord = slab[..., COORD_OFF:COORD_OFF + QUERY_DIM]

    # dn_post_process with mask_dict=None is the identity
    out = {'pred_logits': outputs_class[-1],
           'pred_boxes': outputs_coord[-1],
           'gt': None}
    return [out, mask_dict]


# ----------------------------- demo --------------------------------------------
if __name__ == "__main__":
    key = jax.random.PRNGKey(0)
    k_param, k_data = jax.random.split(key)
    params = init_params(k_param)
    samples = jax.random.uniform(k_data, (2, 3, 32, 32), jnp.float32)  # [B,3,H,W] NCHW

    fwd = jax.jit(dab_detr_forward)
    out, mask_dict = fwd(params, samples)
    jax.block_until_ready(out['pred_logits'])
    jax.block_until_ready(out['pred_boxes'])

    assert out['pred_logits'].shape == (2, NUM_QUERIES, NUM_CLASSES)
    assert out['pred_boxes'].shape == (2, NUM_QUERIES, 4)
    assert bool(jnp.all((out['pred_boxes'] >= 0.0) & (out['pred_boxes'] <= 1.0)))
    assert bool(jnp.all(jnp.isfinite(out['pred_logits'])))
    print("KERNEL_OK")
</pallas_src>

<mosaic_0001>
module attributes {stable_mosaic.version = 11 : i64} {
  func.func @_dab_detr_kernel(%arg0: i32, %arg1: memref<128x8xf32, #tpu.memory_space<vmem>>, %arg2: memref<128x32xf32, #tpu.memory_space<vmem>>, %arg3: memref<16x128xf32, #tpu.memory_space<vmem>>, %arg4: memref<16x32xf32, #tpu.memory_space<vmem>>, %arg5: memref<16x128xf32, #tpu.memory_space<vmem>>, %arg6: memref<8x16xf32, #tpu.memory_space<vmem>>, %arg7: memref<1x16xf32, #tpu.memory_space<vmem>>, %arg8: memref<16x32xf32, #tpu.memory_space<vmem>>, %arg9: memref<1x32xf32, #tpu.memory_space<vmem>>, %arg10: memref<6x32x32xf32, #tpu.memory_space<vmem>>, %arg11: memref<6x1x32xf32, #tpu.memory_space<vmem>>, %arg12: memref<32x32xf32, #tpu.memory_space<vmem>>, %arg13: memref<1x32xf32, #tpu.memory_space<vmem>>, %arg14: memref<32x32xf32, #tpu.memory_space<vmem>>, %arg15: memref<1x32xf32, #tpu.memory_space<vmem>>, %arg16: memref<32x128xf32, #tpu.memory_space<vmem>>, %arg17: memref<1x128xf32, #tpu.memory_space<vmem>>, %arg18: memref<32x128xf32, #tpu.memory_space<vmem>>, %arg19: memref<1x128xf32, #tpu.memory_space<vmem>>, %arg20: memref<6x16x128xf32, #tpu.memory_space<vmem>>) attributes {dimension_semantics = [#tpu.dimension_semantics<arbitrary>], iteration_bounds = array<i64: 1>, scalar_prefetch = 0 : i64, scratch_operands = 0 : i64, tpu.core_type = #tpu.core_type<tc>, window_params = [{pipeline_mode = #tpu.pipeline_mode<synchronous>, transform_indices = @transform_0, window_bounds = array<i64: 128, 8>}, {pipeline_mode = #tpu.pipeline_mode<synchronous>, transform_indices = @transform_1, window_bounds = array<i64: 128, 32>}, {pipeline_mode = #tpu.pipeline_mode<synchronous>, transform_indices = @transform_2, window_bounds = array<i64: 16, 128>}, {pipeline_mode = #tpu.pipeline_mode<synchronous>, transform_indices = @transform_3, window_bounds = array<i64: 16, 32>}, {pipeline_mode = #tpu.pipeline_mode<synchronous>, transform_indices = @transform_4, window_bounds = array<i64: 16, 128>}, {pipeline_mode = #tpu.pipeline_mode<synchronous>, transform_indices = @transform_5, window_bounds = array<i64: 8, 16>}, {pipeline_mode = #tpu.pipeline_mode<synchronous>, transform_indices = @transform_6, window_bounds = array<i64: 1, 16>}, {pipeline_mode = #tpu.pipeline_mode<synchronous>, transform_indices = @transform_7, window_bounds = array<i64: 16, 32>}, {pipeline_mode = #tpu.pipeline_mode<synchronous>, transform_indices = @transform_8, window_bounds = array<i64: 1, 32>}, {pipeline_mode = #tpu.pipeline_mode<synchronous>, transform_indices = @transform_9, window_bounds = array<i64: 6, 32, 32>}, {pipeline_mode = #tpu.pipeline_mode<synchronous>, transform_indices = @transform_10, window_bounds = array<i64: 6, 1, 32>}, {pipeline_mode = #tpu.pipeline_mode<synchronous>, transform_indices = @transform_11, window_bounds = array<i64: 32, 32>}, {pipeline_mode = #tpu.pipeline_mode<synchronous>, transform_indices = @transform_12, window_bounds = array<i64: 1, 32>}, {pipeline_mode = #tpu.pipeline_mode<synchronous>, transform_indices = @transform_13, window_bounds = array<i64: 32, 32>}, {pipeline_mode = #tpu.pipeline_mode<synchronous>, transform_indices = @transform_14, window_bounds = array<i64: 1, 32>}, {pipeline_mode = #tpu.pipeline_mode<synchronous>, transform_indices = @transform_15, window_bounds = array<i64: 32, 128>}, {pipeline_mode = #tpu.pipeline_mode<synchronous>, transform_indices = @transform_16, window_bounds = array<i64: 1, 128>}, {pipeline_mode = #tpu.pipeline_mode<synchronous>, transform_indices = @transform_17, window_bounds = array<i64: 32, 128>}, {pipeline_mode = #tpu.pipeline_mode<synchronous>, transform_indices = @transform_18, window_bounds = array<i64: 1, 128>}, {pipeline_mode = #tpu.pipeline_mode<synchronous>, transform_indices = @transform_19, window_bounds = array<i64: 6, 16, 128>}]} {
    %c0 = arith.constant 0 : index
    %c0_0 = arith.constant 0 : index
    %0 = vector.load %arg1[%c0, %c0_0] : memref<128x8xf32, #tpu.memory_space<vmem>>, vector<128x8xf32>
    %c0_1 = arith.constant 0 : index
    %c0_2 = arith.constant 0 : index
    %1 = vector.load %arg6[%c0_1, %c0_2] : memref<8x16xf32, #tpu.memory_space<vmem>>, vector<8x16xf32>
    %cst = arith.constant dense<0.000000e+00> : vector<128x16xf32>
    %2 = tpu.matmul %0, %1, %cst {dimension_numbers = #tpu.dot_dimension_numbers<[1], [0], [0], [1], [0, 0, 1, 1], [], []>} : vector<128x8xf32>, vector<8x16xf32>, vector<128x16xf32> -> vector<128x16xf32>
    %c0_3 = arith.constant 0 : index
    %c0_4 = arith.constant 0 : index
    %3 = vector.load %arg7[%c0_3, %c0_4] : memref<1x16xf32, #tpu.memory_space<vmem>>, vector<1x16xf32>
    %4 = vector.broadcast %3 : vector<1x16xf32> to vector<128x16xf32>
    %5 = arith.addf %2, %4 : vector<128x16xf32>
    %cst_5 = arith.constant 0.000000e+00 : f32
    %6 = vector.broadcast %cst_5 : f32 to vector<128x16xf32>
    %7 = arith.maximumf %5, %6 : vector<128x16xf32>
    %c0_6 = arith.constant 0 : index
    %c0_7 = arith.constant 0 : index
    %8 = vector.load %arg8[%c0_6, %c0_7] : memref<16x32xf32, #tpu.memory_space<vmem>>, vector<16x32xf32>
    %cst_8 = arith.constant dense<0.000000e+00> : vector<128x32xf32>
    %9 = tpu.matmul %7, %8, %cst_8 {dimension_numbers = #tpu.dot_dimension_numbers<[1], [0], [0], [1], [0, 0, 1, 1], [], []>} : vector<128x16xf32>, vector<16x32xf32>, vector<128x32xf32> -> vector<128x32xf32>
    %c0_9 = arith.constant 0 : index
    %c0_10 = arith.constant 0 : index
    %10 = vector.load %arg9[%c0_9, %c0_10] : memref<1x32xf32, #tpu.memory_space<vmem>>, vector<1x32xf32>
    %11 = vector.broadcast %10 : vector<1x32xf32> to vector<128x32xf32>
    %12 = arith.addf %9, %11 : vector<128x32xf32>
    %c0_11 = arith.constant 0 : index
    %c0_12 = arith.constant 0 : index
    %13 = vector.load %arg2[%c0_11, %c0_12] : memref<128x32xf32, #tpu.memory_space<vmem>>, vector<128x32xf32>
    %14 = arith.addf %12, %13 : vector<128x32xf32>
    %c0_13 = arith.constant 0 : index
    %c0_14 = arith.constant 0 : index
    %15 = vector.load %arg3[%c0_13, %c0_14] : memref<16x128xf32, #tpu.memory_space<vmem>>, vector<16x128xf32>
    %cst_15 = arith.constant dense<0.000000e+00> : vector<16x32xf32>
    %16 = tpu.matmul %15, %14, %cst_15 {dimension_numbers = #tpu.dot_dimension_numbers<[1], [0], [0], [1], [0, 0, 1, 1], [], []>} : vector<16x128xf32>, vector<128x32xf32>, vector<16x32xf32> -> vector<16x32xf32>
    %c0_16 = arith.constant 0 : index
    %c0_17 = arith.constant 0 : index
    %17 = vector.load %arg5[%c0_16, %c0_17] : memref<16x128xf32, #tpu.memory_space<vmem>>, vector<16x128xf32>
    %cst_18 = arith.constant 0.000000e+00 : f32
    %cst_19 = arith.constant 1.000000e+00 : f32
    %18 = vector.broadcast %cst_18 : f32 to vector<16x128xf32>
    %19 = arith.maximumf %18, %17 : vector<16x128xf32>
    %20 = vector.broadcast %cst_19 : f32 to vector<16x128xf32>
    %21 = arith.minimumf %20, %19 : vector<16x128xf32>
    %cst_20 = arith.constant 1.000000e-03 : f32
    %22 = vector.broadcast %cst_20 : f32 to vector<16x128xf32>
    %23 = arith.maximumf %21, %22 : vector<16x128xf32>
    %cst_21 = arith.constant 1.000000e+00 : f32
    %24 = vector.broadcast %cst_21 : f32 to vector<16x128xf32>
    %25 = arith.subf %24, %21 : vector<16x128xf32>
    %cst_22 = arith.constant 1.000000e-03 : f32
    %26 = vector.broadcast %cst_22 : f32 to vector<16x128xf32>
    %27 = arith.maximumf %25, %26 : vector<16x128xf32>
    %28 = arith.divf %23, %27 : vector<16x128xf32>
    %29 = math.log %28 : vector<16x128xf32>
    %30 = tpu.iota {dimensions = array<i32: 1>} : vector<16x128xi32>
    %c8_i32 = arith.constant 8 : i32
    %31 = vector.broadcast %c8_i32 : i32 to vector<16x128xi32>
    %32 = arith.cmpi sge, %30, %31 : vector<16x128xi32>
    %c12_i32 = arith.constant 12 : i32
    %33 = vector.broadcast %c12_i32 : i32 to vector<16x128xi32>
    %34 = arith.cmpi slt, %30, %33 : vector<16x128xi32>
    %35 = arith.andi %32, %34 : vector<16x128xi1>
    %c0_23 = arith.constant 0 : index
    %c0_24 = arith.constant 0 : index
    %36 = vector.load %arg4[%c0_23, %c0_24] : memref<16x32xf32, #tpu.memory_space<vmem>>, vector<16x32xf32>
    %37 = arith.addf %36, %16 : vector<16x32xf32>
    %c0_25 = arith.constant 0 : index
    %c0_26 = arith.constant 0 : index
    %c0_27 = arith.constant 0 : index
    %38 = vector.load %arg10[%c0_25, %c0_26, %c0_27] : memref<6x32x32xf32, #tpu.memory_space<vmem>>, vector<1x32x32xf32>
    %39 = vector.shape_cast %38 : vector<1x32x32xf32> to vector<32x32xf32>
    %cst_28 = arith.constant dense<0.000000e+00> : vector<16x32xf32>
    %40 = tpu.matmul %37, %39, %cst_28 {dimension_numbers = #tpu.dot_dimension_numbers<[1], [0], [0], [1], [0, 0, 1, 1], [], []>} : vector<16x32xf32>, vector<32x32xf32>, vector<16x32xf32> -> vector<16x32xf32>
    %c0_29 = arith.constant 0 : index
    %c0_30 = arith.constant 0 : index
    %c0_31 = arith.constant 0 : index
    %41 = vector.load %arg11[%c0_29, %c0_30, %c0_31] : memref<6x1x32xf32, #tpu.memory_space<vmem>>, vector<1x1x32xf32>
    %42 = vector.shape_cast %41 : vector<1x1x32xf32> to vector<1x32xf32>
    %43 = vector.broadcast %42 : vector<1x32xf32> to vector<16x32xf32>
    %44 = arith.addf %40, %43 : vector<16x32xf32>
    %cst_32 = arith.constant 0.000000e+00 : f32
    %45 = vector.broadcast %cst_32 : f32 to vector<16x32xf32>
    %46 = arith.maximumf %44, %45 : vector<16x32xf32>
    %c0_33 = arith.constant 0 : index
    %c0_34 = arith.constant 0 : index
    %47 = vector.load %arg12[%c0_33, %c0_34] : memref<32x32xf32, #tpu.memory_space<vmem>>, vector<32x32xf32>
    %cst_35 = arith.constant dense<0.000000e+00> : vector<16x32xf32>
    %48 = tpu.matmul %46, %47, %cst_35 {dimension_numbers = #tpu.dot_dimension_numbers<[1], [0], [0], [1], [0, 0, 1, 1], [], []>} : vector<16x32xf32>, vector<32x32xf32>, vector<16x32xf32> -> vector<16x32xf32>
    %c0_36 = arith.constant 0 : index
    %c0_37 = arith.constant 0 : index
    %49 = vector.load %arg13[%c0_36, %c0_37] : memref<1x32xf32, #tpu.memory_space<vmem>>, vector<1x32xf32>
    %50 = vector.broadcast %49 : vector<1x32xf32> to vector<16x32xf32>
    %51 = arith.addf %48, %50 : vector<16x32xf32>
    %cst_38 = arith.constant 0.000000e+00 : f32
    %52 = vector.broadcast %cst_38 : f32 to vector<16x32xf32>
    %53 = arith.maximumf %51, %52 : vector<16x32xf32>
    %c0_39 = arith.constant 0 : index
    %c0_40 = arith.constant 0 : index
    %54 = vector.load %arg14[%c0_39, %c0_40] : memref<32x32xf32, #tpu.memory_space<vmem>>, vector<32x32xf32>
    %cst_41 = arith.constant dense<0.000000e+00> : vector<16x32xf32>
    %55 = tpu.matmul %53, %54, %cst_41 {dimension_numbers = #tpu.dot_dimension_numbers<[1], [0], [0], [1], [0, 0, 1, 1], [], []>} : vector<16x32xf32>, vector<32x32xf32>, vector<16x32xf32> -> vector<16x32xf32>
    %c0_42 = arith.constant 0 : index
    %c0_43 = arith.constant 0 : index
    %56 = vector.load %arg15[%c0_42, %c0_43] : memref<1x32xf32, #tpu.memory_space<vmem>>, vector<1x32xf32>
    %57 = vector.broadcast %56 : vector<1x32xf32> to vector<16x32xf32>
    %58 = arith.addf %55, %57 : vector<16x32xf32>
    %cst_44 = arith.constant 0.000000e+00 : f32
    %59 = vector.broadcast %cst_44 : f32 to vector<16x32xf32>
    %60 = arith.maximumf %58, %59 : vector<16x32xf32>
    %c0_45 = arith.constant 0 : index
    %c0_46 = arith.constant 0 : index
    %61 = vector.load %arg18[%c0_45, %c0_46] : memref<32x128xf32, #tpu.memory_space<vmem>>, vector<32x128xf32>
    %cst_47 = arith.constant dense<0.000000e+00> : vector<16x128xf32>
    %62 = tpu.matmul %46, %61, %cst_47 {dimension_numbers = #tpu.dot_dimension_numbers<[1], [0], [0], [1], [0, 0, 1, 1], [], []>} : vector<16x32xf32>, vector<32x128xf32>, vector<16x128xf32> -> vector<16x128xf32>
    %c0_48 = arith.constant 0 : index
    %c0_49 = arith.constant 0 : index
    %63 = vector.load %arg19[%c0_48, %c0_49] : memref<1x128xf32, #tpu.memory_space<vmem>>, vector<1x128xf32>
    %64 = vector.broadcast %63 : vector<1x128xf32> to vector<16x128xf32>
    %65 = arith.addf %62, %64 : vector<16x128xf32>
    %c0_50 = arith.constant 0 : index
    %c0_51 = arith.constant 0 : index
    %66 = vector.load %arg16[%c0_50, %c0_51] : memref<32x128xf32, #tpu.memory_space<vmem>>, vector<32x128xf32>
    %cst_52 = arith.constant dense<0.000000e+00> : vector<16x128xf32>
    %67 = tpu.matmul %60, %66, %cst_52 {dimension_numbers = #tpu.dot_dimension_numbers<[1], [0], [0], [1], [0, 0, 1, 1], [], []>} : vector<16x32xf32>, vector<32x128xf32>, vector<16x128xf32> -> vector<16x128xf32>
    %68 = arith.addf %65, %67 : vector<16x128xf32>
    %c0_53 = arith.constant 0 : index
    %c0_54 = arith.constant 0 : index
    %69 = vector.load %arg17[%c0_53, %c0_54] : memref<1x128xf32, #tpu.memory_space<vmem>>, vector<1x128xf32>
    %70 = vector.broadcast %69 : vector<1x128xf32> to vector<16x128xf32>
    %71 = arith.addf %68, %70 : vector<16x128xf32>
    %72 = arith.addf %71, %29 : vector<16x128xf32>
    %73 = arith.negf %72 : vector<16x128xf32>
    %74 = math.exp %73 : vector<16x128xf32>
    %cst_55 = arith.constant 1.000000e+00 : f32
    %75 = vector.broadcast %cst_55 : f32 to vector<16x128xf32>
    %76 = arith.addf %75, %74 : vector<16x128xf32>
    %77 = arith.divf %75, %76 : vector<16x128xf32>
    %78 = arith.select %35, %77, %72 : vector<16x128xi1>, vector<16x128xf32>
    %c0_56 = arith.constant 0 : index
    %c0_57 = arith.constant 0 : index
    %c0_58 = arith.constant 0 : index
    %79 = vector.load %arg20[%c0_56, %c0_57, %c0_58] : memref<6x16x128xf32, #tpu.memory_space<vmem>>, vector<1x16x128xf32>
    %80 = vector.shape_cast %79 : vector<1x16x128xf32> to vector<16x128xf32>
    %81 = vector.shape_cast %78 : vector<16x128xf32> to vector<1x16x128xf32>
    tpu.vector_store %arg20[%c0_56, %c0_57, %c0_58], %81 {strides = array<i32>} : memref<6x16x128xf32, #tpu.memory_space<vmem>>, vector<1x16x128xf32>,
    %82 = arith.addf %46, %16 : vector<16x32xf32>
    %c1 = arith.constant 1 : index
    %c0_59 = arith.constant 0 : index
    %c0_60 = arith.constant 0 : index
    %83 = vector.load %arg10[%c1, %c0_59, %c0_60] : memref<6x32x32xf32, #tpu.memory_space<vmem>>, vector<1x32x32xf32>
    %84 = vector.shape_cast %83 : vector<1x32x32xf32> to vector<32x32xf32>
    %cst_61 = arith.constant dense<0.000000e+00> : vector<16x32xf32>
    %85 = tpu.matmul %82, %84, %cst_61 {dimension_numbers = #tpu.dot_dimension_numbers<[1], [0], [0], [1], [0, 0, 1, 1], [], []>} : vector<16x32xf32>, vector<32x32xf32>, vector<16x32xf32> -> vector<16x32xf32>
    %c1_62 = arith.constant 1 : index
    %c0_63 = arith.constant 0 : index
    %c0_64 = arith.constant 0 : index
    %86 = vector.load %arg11[%c1_62, %c0_63, %c0_64] : memref<6x1x32xf32, #tpu.memory_space<vmem>>, vector<1x1x32xf32>
    %87 = vector.shape_cast %86 : vector<1x1x32xf32> to vector<1x32xf32>
    %88 = vector.broadcast %87 : vector<1x32xf32> to vector<16x32xf32>
    %89 = arith.addf %85, %88 : vector<16x32xf32>
    %cst_65 = arith.constant 0.000000e+00 : f32
    %90 = vector.broadcast %cst_65 : f32 to vector<16x32xf32>
    %91 = arith.maximumf %89, %90 : vector<16x32xf32>
    %c0_66 = arith.constant 0 : index
    %c0_67 = arith.constant 0 : index
    %92 = vector.load %arg12[%c0_66, %c0_67] : memref<32x32xf32, #tpu.memory_space<vmem>>, vector<32x32xf32>
    %cst_68 = arith.constant dense<0.000000e+00> : vector<16x32xf32>
    %93 = tpu.matmul %91, %92, %cst_68 {dimension_numbers = #tpu.dot_dimension_numbers<[1], [0], [0], [1], [0, 0, 1, 1], [], []>} : vector<16x32xf32>, vector<32x32xf32>, vector<16x32xf32> -> vector<16x32xf32>
    %c0_69 = arith.constant 0 : index
    %c0_70 = arith.constant 0 : index
    %94 = vector.load %arg13[%c0_69, %c0_70] : memref<1x32xf32, #tpu.memory_space<vmem>>, vector<1x32xf32>
    %95 = vector.broadcast %94 : vector<1x32xf32> to vector<16x32xf32>
    %96 = arith.addf %93, %95 : vector<16x32xf32>
    %cst_71 = arith.constant 0.000000e+00 : f32
    %97 = vector.broadcast %cst_71 : f32 to vector<16x32xf32>
    %98 = arith.maximumf %96, %97 : vector<16x32xf32>
    %c0_72 = arith.constant 0 : index
    %c0_73 = arith.constant 0 : index
    %99 = vector.load %arg14[%c0_72, %c0_73] : memref<32x32xf32, #tpu.memory_space<vmem>>, vector<32x32xf32>
    %cst_74 = arith.constant dense<0.000000e+00> : vector<16x32xf32>
    %100 = tpu.matmul %98, %99, %cst_74 {dimension_numbers = #tpu.dot_dimension_numbers<[1], [0], [0], [1], [0, 0, 1, 1], [], []>} : vector<16x32xf32>, vector<32x32xf32>, vector<16x32xf32> -> vector<16x32xf32>
    %c0_75 = arith.constant 0 : index
    %c0_76 = arith.constant 0 : index
    %101 = vector.load %arg15[%c0_75, %c0_76] : memref<1x32xf32, #tpu.memory_space<vmem>>, vector<1x32xf32>
    %102 = vector.broadcast %101 : vector<1x32xf32> to vector<16x32xf32>
    %103 = arith.addf %100, %102 : vector<16x32xf32>
    %cst_77 = arith.constant 0.000000e+00 : f32
    %104 = vector.broadcast %cst_77 : f32 to vector<16x32xf32>
    %105 = arith.maximumf %103, %104 : vector<16x32xf32>
    %c0_78 = arith.constant 0 : index
    %c0_79 = arith.constant 0 : index
    %106 = vector.load %arg18[%c0_78, %c0_79] : memref<32x128xf32, #tpu.memory_space<vmem>>, vector<32x128xf32>
    %cst_80 = arith.constant dense<0.000000e+00> : vector<16x128xf32>
    %107 = tpu.matmul %91, %106, %cst_80 {dimension_numbers = #tpu.dot_dimension_numbers<[1], [0], [0], [1], [0, 0, 1, 1], [], []>} : vector<16x32xf32>, vector<32x128xf32>, vector<16x128xf32> -> vector<16x128xf32>
    %c0_81 = arith.constant 0 : index
    %c0_82 = arith.constant 0 : index
    %108 = vector.load %arg19[%c0_81, %c0_82] : memref<1x128xf32, #tpu.memory_space<vmem>>, vector<1x128xf32>
    %109 = vector.broadcast %108 : vector<1x128xf32> to vector<16x128xf32>
    %110 = arith.addf %107, %109 : vector<16x128xf32>
    %c0_83 = arith.constant 0 : index
    %c0_84 = arith.constant 0 : index
    %111 = vector.load %arg16[%c0_83, %c0_84] : memref<32x128xf32, #tpu.memory_space<vmem>>, vector<32x128xf32>
    %cst_85 = arith.constant dense<0.000000e+00> : vector<16x128xf32>
    %112 = tpu.matmul %105, %111, %cst_85 {dimension_numbers = #tpu.dot_dimension_numbers<[1], [0], [0], [1], [0, 0, 1, 1], [], []>} : vector<16x32xf32>, vector<32x128xf32>, vector<16x128xf32> -> vector<16x128xf32>
    %113 = arith.addf %110, %112 : vector<16x128xf32>
    %c0_86 = arith.constant 0 : index
    %c0_87 = arith.constant 0 : index
    %114 = vector.load %arg17[%c0_86, %c0_87] : memref<1x128xf32, #tpu.memory_space<vmem>>, vector<1x128xf32>
    %115 = vector.broadcast %114 : vector<1x128xf32> to vector<16x128xf32>
    %116 = arith.addf %113, %115 : vector<16x128xf32>
    %117 = arith.addf %116, %29 : vector<16x128xf32>
    %118 = arith.negf %117 : vector<16x128xf32>
    %119 = math.exp %118 : vector<16x128xf32>
    %cst_88 = arith.constant 1.000000e+00 : f32
    %120 = vector.broadcast %cst_88 : f32 to vector<16x128xf32>
    %121 = arith.addf %120, %119 : vector<16x128xf32>
    %122 = arith.divf %120, %121 : vector<16x128xf32>
    %123 = arith.select %35, %122, %117 : vector<16x128xi1>, vector<16x128xf32>
    %c1_89 = arith.constant 1 : index
    %c0_90 = arith.constant 0 : index
    %c0_91 = arith.constant 0 : index
    %124 = vector.load %arg20[%c1_89, %c0_90, %c0_91] : memref<6x16x128xf32, #tpu.memory_space<vmem>>, vector<1x16x128xf32>
    %125 = vector.shape_cast %124 : vector<1x16x128xf32> to vector<16x128xf32>
    %126 = vector.shape_cast %123 : vector<16x128xf32> to vector<1x16x128xf32>
    tpu.vector_store %arg20[%c1_89, %c0_90, %c0_91], %126 {strides = array<i32>} : memref<6x16x128xf32, #tpu.memory_space<vmem>>, vector<1x16x128xf32>,
    %127 = arith.addf %91, %16 : vector<16x32xf32>
    %c2 = arith.constant 2 : index
    %c0_92 = arith.constant 0 : index
    %c0_93 = arith.constant 0 : index
    %128 = vector.load %arg10[%c2, %c0_92, %c0_93] : memref<6x32x32xf32, #tpu.memory_space<vmem>>, vector<1x32x32xf32>
    %129 = vector.shape_cast %128 : vector<1x32x32xf32> to vector<32x32xf32>
    %cst_94 = arith.constant dense<0.000000e+00> : vector<16x32xf32>
    %130 = tpu.matmul %127, %129, %cst_94 {dimension_numbers = #tpu.dot_dimension_numbers<[1], [0], [0], [1], [0, 0, 1, 1], [], []>} : vector<16x32xf32>, vector<32x32xf32>, vector<16x32xf32> -> vector<16x32xf32>
    %c2_95 = arith.constant 2 : index
    %c0_96 = arith.constant 0 : index
    %c0_97 = arith.constant 0 : index
    %131 = vector.load %arg11[%c2_95, %c0_96, %c0_97] : memref<6x1x32xf32, #tpu.memory_space<vmem>>, vector<1x1x32xf32>
    %132 = vector.shape_cast %131 : vector<1x1x32xf32> to vector<1x32xf32>
    %133 = vector.broadcast %132 : vector<1x32xf32> to vector<16x32xf32>
    %134 = arith.addf %130, %133 : vector<16x32xf32>
    %cst_98 = arith.constant 0.000000e+00 : f32
    %135 = vector.broadcast %cst_98 : f32 to vector<16x32xf32>
    %136 = arith.maximumf %134, %135 : vector<16x32xf32>
    %c0_99 = arith.constant 0 : index
    %c0_100 = arith.constant 0 : index
    %137 = vector.load %arg12[%c0_99, %c0_100] : memref<32x32xf32, #tpu.memory_space<vmem>>, vector<32x32xf32>
    %cst_101 = arith.constant dense<0.000000e+00> : vector<16x32xf32>
    %138 = tpu.matmul %136, %137, %cst_101 {dimension_numbers = #tpu.dot_dimension_numbers<[1], [0], [0], [1], [0, 0, 1, 1], [], []>} : vector<16x32xf32>, vector<32x32xf32>, vector<16x32xf32> -> vector<16x32xf32>
    %c0_102 = arith.constant 0 : index
    %c0_103 = arith.constant 0 : index
    %139 = vector.load %arg13[%c0_102, %c0_103] : memref<1x32xf32, #tpu.memory_space<vmem>>, vector<1x32xf32>
    %140 = vector.broadcast %139 : vector<1x32xf32> to vector<16x32xf32>
    %141 = arith.addf %138, %140 : vector<16x32xf32>
    %cst_104 = arith.constant 0.000000e+00 : f32
    %142 = vector.broadcast %cst_104 : f32 to vector<16x32xf32>
    %143 = arith.maximumf %141, %142 : vector<16x32xf32>
    %c0_105 = arith.constant 0 : index
    %c0_106 = arith.constant 0 : index
    %144 = vector.load %arg14[%c0_105, %c0_106] : memref<32x32xf32, #tpu.memory_space<vmem>>, vector<32x32xf32>
    %cst_107 = arith.constant dense<0.000000e+00> : vector<16x32xf32>
    %145 = tpu.matmul %143, %144, %cst_107 {dimension_numbers = #tpu.dot_dimension_numbers<[1], [0], [0], [1], [0, 0, 1, 1], [], []>} : vector<16x32xf32>, vector<32x32xf32>, vector<16x32xf32> -> vector<16x32xf32>
    %c0_108 = arith.constant 0 : index
    %c0_109 = arith.constant 0 : index
    %146 = vector.load %arg15[%c0_108, %c0_109] : memref<1x32xf32, #tpu.memory_space<vmem>>, vector<1x32xf32>
    %147 = vector.broadcast %146 : vector<1x32xf32> to vector<16x32xf32>
    %148 = arith.addf %145, %147 : vector<16x32xf32>
    %cst_110 = arith.constant 0.000000e+00 : f32
    %149 = vector.broadcast %cst_110 : f32 to vector<16x32xf32>
    %150 = arith.maximumf %148, %149 : vector<16x32xf32>
    %c0_111 = arith.constant 0 : index
    %c0_112 = arith.constant 0 : index
    %151 = vector.load %arg18[%c0_111, %c0_112] : memref<32x128xf32, #tpu.memory_space<vmem>>, vector<32x128xf32>
    %cst_113 = arith.constant dense<0.000000e+00> : vector<16x128xf32>
    %152 = tpu.matmul %136, %151, %cst_113 {dimension_numbers = #tpu.dot_dimension_numbers<[1], [0], [0], [1], [0, 0, 1, 1], [], []>} : vector<16x32xf32>, vector<32x128xf32>, vector<16x128xf32> -> vector<16x128xf32>
    %c0_114 = arith.constant 0 : index
    %c0_115 = arith.constant 0 : index
    %153 = vector.load %arg19[%c0_114, %c0_115] : memref<1x128xf32, #tpu.memory_space<vmem>>, vector<1x128xf32>
    %154 = vector.broadcast %153 : vector<1x128xf32> to vector<16x128xf32>
    %155 = arith.addf %152, %154 : vector<16x128xf32>
    %c0_116 = arith.constant 0 : index
    %c0_117 = arith.constant 0 : index
    %156 = vector.load %arg16[%c0_116, %c0_117] : memref<32x128xf32, #tpu.memory_space<vmem>>, vector<32x128xf32>
    %cst_118 = arith.constant dense<0.000000e+00> : vector<16x128xf32>
    %157 = tpu.matmul %150, %156, %cst_118 {dimension_numbers = #tpu.dot_dimension_numbers<[1], [0], [0], [1], [0, 0, 1, 1], [], []>} : vector<16x32xf32>, vector<32x128xf32>, vector<16x128xf32> -> vector<16x128xf32>
    %158 = arith.addf %155, %157 : vector<16x128xf32>
    %c0_119 = arith.constant 0 : index
    %c0_120 = arith.constant 0 : index
    %159 = vector.load %arg17[%c0_119, %c0_120] : memref<1x128xf32, #tpu.memory_space<vmem>>, vector<1x128xf32>
    %160 = vector.broadcast %159 : vector<1x128xf32> to vector<16x128xf32>
    %161 = arith.addf %158, %160 : vector<16x128xf32>
    %162 = arith.addf %161, %29 : vector<16x128xf32>
    %163 = arith.negf %162 : vector<16x128xf32>
    %164 = math.exp %163 : vector<16x128xf32>
    %cst_121 = arith.constant 1.000000e+00 : f32
    %165 = vector.broadcast %cst_121 : f32 to vector<16x128xf32>
    %166 = arith.addf %165, %164 : vector<16x128xf32>
    %167 = arith.divf %165, %166 : vector<16x128xf32>
    %168 = arith.select %35, %167, %162 : vector<16x128xi1>, vector<16x128xf32>
    %c2_122 = arith.constant 2 : index
    %c0_123 = arith.constant 0 : index
    %c0_124 = arith.constant 0 : index
    %169 = vector.load %arg20[%c2_122, %c0_123, %c0_124] : memref<6x16x128xf32, #tpu.memory_space<vmem>>, vector<1x16x128xf32>
    %170 = vector.shape_cast %169 : vector<1x16x128xf32> to vector<16x128xf32>
    %171 = vector.shape_cast %168 : vector<16x128xf32> to vector<1x16x128xf32>
    tpu.vector_store %arg20[%c2_122, %c0_123, %c0_124], %171 {strides = array<i32>} : memref<6x16x128xf32, #tpu.memory_space<vmem>>, vector<1x16x128xf32>,
    %172 = arith.addf %136, %16 : vector<16x32xf32>
    %c3 = arith.constant 3 : index
    %c0_125 = arith.constant 0 : index
    %c0_126 = arith.constant 0 : index
    %173 = vector.load %arg10[%c3, %c0_125, %c0_126] : memref<6x32x32xf32, #tpu.memory_space<vmem>>, vector<1x32x32xf32>
    %174 = vector.shape_cast %173 : vector<1x32x32xf32> to vector<32x32xf32>
    %cst_127 = arith.constant dense<0.000000e+00> : vector<16x32xf32>
    %175 = tpu.matmul %172, %174, %cst_127 {dimension_numbers = #tpu.dot_dimension_numbers<[1], [0], [0], [1], [0, 0, 1, 1], [], []>} : vector<16x32xf32>, vector<32x32xf32>, vector<16x32xf32> -> vector<16x32xf32>
    %c3_128 = arith.constant 3 : index
    %c0_129 = arith.constant 0 : index
    %c0_130 = arith.constant 0 : index
    %176 = vector.load %arg11[%c3_128, %c0_129, %c0_130] : memref<6x1x32xf32, #tpu.memory_space<vmem>>, vector<1x1x32xf32>
    %177 = vector.shape_cast %176 : vector<1x1x32xf32> to vector<1x32xf32>
    %178 = vector.broadcast %177 : vector<1x32xf32> to vector<16x32xf32>
    %179 = arith.addf %175, %178 : vector<16x32xf32>
    %cst_131 = arith.constant 0.000000e+00 : f32
    %180 = vector.broadcast %cst_131 : f32 to vector<16x32xf32>
    %181 = arith.maximumf %179, %180 : vector<16x32xf32>
    %c0_132 = arith.constant 0 : index
    %c0_133 = arith.constant 0 : index
    %182 = vector.load %arg12[%c0_132, %c0_133] : memref<32x32xf32, #tpu.memory_space<vmem>>, vector<32x32xf32>
    %cst_134 = arith.constant dense<0.000000e+00> : vector<16x32xf32>
    %183 = tpu.matmul %181, %182, %cst_134 {dimension_numbers = #tpu.dot_dimension_numbers<[1], [0], [0], [1], [0, 0, 1, 1], [], []>} : vector<16x32xf32>, vector<32x32xf32>, vector<16x32xf32> -> vector<16x32xf32>
    %c0_135 = arith.constant 0 : index
    %c0_136 = arith.constant 0 : index
    %184 = vector.load %arg13[%c0_135, %c0_136] : memref<1x32xf32, #tpu.memory_space<vmem>>, vector<1x32xf32>
    %185 = vector.broadcast %184 : vector<1x32xf32> to vector<16x32xf32>
    %186 = arith.addf %183, %185 : vector<16x32xf32>
    %cst_137 = arith.constant 0.000000e+00 : f32
    %187 = vector.broadcast %cst_137 : f32 to vector<16x32xf32>
    %188 = arith.maximumf %186, %187 : vector<16x32xf32>
    %c0_138 = arith.constant 0 : index
    %c0_139 = arith.constant 0 : index
    %189 = vector.load %arg14[%c0_138, %c0_139] : memref<32x32xf32, #tpu.memory_space<vmem>>, vector<32x32xf32>
    %cst_140 = arith.constant dense<0.000000e+00> : vector<16x32xf32>
    %190 = tpu.matmul %188, %189, %cst_140 {dimension_numbers = #tpu.dot_dimension_numbers<[1], [0], [0], [1], [0, 0, 1, 1], [], []>} : vector<16x32xf32>, vector<32x32xf32>, vector<16x32xf32> -> vector<16x32xf32>
    %c0_141 = arith.constant 0 : index
    %c0_142 = arith.constant 0 : index
    %191 = vector.load %arg15[%c0_141, %c0_142] : memref<1x32xf32, #tpu.memory_space<vmem>>, vector<1x32xf32>
    %192 = vector.broadcast %191 : vector<1x32xf32> to vector<16x32xf32>
    %193 = arith.addf %190, %192 : vector<16x32xf32>
    %cst_143 = arith.constant 0.000000e+00 : f32
    %194 = vector.broadcast %cst_143 : f32 to vector<16x32xf32>
    %195 = arith.maximumf %193, %194 : vector<16x32xf32>
    %c0_144 = arith.constant 0 : index
    %c0_145 = arith.constant 0 : index
    %196 = vector.load %arg18[%c0_144, %c0_145] : memref<32x128xf32, #tpu.memory_space<vmem>>, vector<32x128xf32>
    %cst_146 = arith.constant dense<0.000000e+00> : vector<16x128xf32>
    %197 = tpu.matmul %181, %196, %cst_146 {dimension_numbers = #tpu.dot_dimension_numbers<[1], [0], [0], [1], [0, 0, 1, 1], [], []>} : vector<16x32xf32>, vector<32x128xf32>, vector<16x128xf32> -> vector<16x128xf32>
    %c0_147 = arith.constant 0 : index
    %c0_148 = arith.constant 0 : index
    %198 = vector.load %arg19[%c0_147, %c0_148] : memref<1x128xf32, #tpu.memory_space<vmem>>, vector<1x128xf32>
    %199 = vector.broadcast %198 : vector<1x128xf32> to vector<16x128xf32>
    %200 = arith.addf %197, %199 : vector<16x128xf32>
    %c0_149 = arith.constant 0 : index
    %c0_150 = arith.constant 0 : index
    %201 = vector.load %arg16[%c0_149, %c0_150] : memref<32x128xf32, #tpu.memory_space<vmem>>, vector<32x128xf32>
    %cst_151 = arith.constant dense<0.000000e+00> : vector<16x128xf32>
    %202 = tpu.matmul %195, %201, %cst_151 {dimension_numbers = #tpu.dot_dimension_numbers<[1], [0], [0], [1], [0, 0, 1, 1], [], []>} : vector<16x32xf32>, vector<32x128xf32>, vector<16x128xf32> -> vector<16x128xf32>
    %203 = arith.addf %200, %202 : vector<16x128xf32>
    %c0_152 = arith.constant 0 : index
    %c0_153 = arith.constant 0 : index
    %204 = vector.load %arg17[%c0_152, %c0_153] : memref<1x128xf32, #tpu.memory_space<vmem>>, vector<1x128xf32>
    %205 = vector.broadcast %204 : vector<1x128xf32> to vector<16x128xf32>
    %206 = arith.addf %203, %205 : vector<16x128xf32>
    %207 = arith.addf %206, %29 : vector<16x128xf32>
    %208 = arith.negf %207 : vector<16x128xf32>
    %209 = math.exp %208 : vector<16x128xf32>
    %cst_154 = arith.constant 1.000000e+00 : f32
    %210 = vector.broadcast %cst_154 : f32 to vector<16x128xf32>
    %211 = arith.addf %210, %209 : vector<16x128xf32>
    %212 = arith.divf %210, %211 : vector<16x128xf32>
    %213 = arith.select %35, %212, %207 : vector<16x128xi1>, vector<16x128xf32>
    %c3_155 = arith.constant 3 : index
    %c0_156 = arith.constant 0 : index
    %c0_157 = arith.constant 0 : index
    %214 = vector.load %arg20[%c3_155, %c0_156, %c0_157] : memref<6x16x128xf32, #tpu.memory_space<vmem>>, vector<1x16x128xf32>
    %215 = vector.shape_cast %214 : vector<1x16x128xf32> to vector<16x128xf32>
    %216 = vector.shape_cast %213 : vector<16x128xf32> to vector<1x16x128xf32>
    tpu.vector_store %arg20[%c3_155, %c0_156, %c0_157], %216 {strides = array<i32>} : memref<6x16x128xf32, #tpu.memory_space<vmem>>, vector<1x16x128xf32>,
    %217 = arith.addf %181, %16 : vector<16x32xf32>
    %c4 = arith.constant 4 : index
    %c0_158 = arith.constant 0 : index
    %c0_159 = arith.constant 0 : index
    %218 = vector.load %arg10[%c4, %c0_158, %c0_159] : memref<6x32x32xf32, #tpu.memory_space<vmem>>, vector<1x32x32xf32>
    %219 = vector.shape_cast %218 : vector<1x32x32xf32> to vector<32x32xf32>
    %cst_160 = arith.constant dense<0.000000e+00> : vector<16x32xf32>
    %220 = tpu.matmul %217, %219, %cst_160 {dimension_numbers = #tpu.dot_dimension_numbers<[1], [0], [0], [1], [0, 0, 1, 1], [], []>} : vector<16x32xf32>, vector<32x32xf32>, vector<16x32xf32> -> vector<16x32xf32>
    %c4_161 = arith.constant 4 : index
    %c0_162 = arith.constant 0 : index
    %c0_163 = arith.constant 0 : index
    %221 = vector.load %arg11[%c4_161, %c0_162, %c0_163] : memref<6x1x32xf32, #tpu.memory_space<vmem>>, vector<1x1x32xf32>
    %222 = vector.shape_cast %221 : vector<1x1x32xf32> to vector<1x32xf32>
    %223 = vector.broadcast %222 : vector<1x32xf32> to vector<16x32xf32>
    %224 = arith.addf %220, %223 : vector<16x32xf32>
    %cst_164 = arith.constant 0.000000e+00 : f32
    %225 = vector.broadcast %cst_164 : f32 to vector<16x32xf32>
    %226 = arith.maximumf %224, %225 : vector<16x32xf32>
    %c0_165 = arith.constant 0 : index
    %c0_166 = arith.constant 0 : index
    %227 = vector.load %arg12[%c0_165, %c0_166] : memref<32x32xf32, #tpu.memory_space<vmem>>, vector<32x32xf32>
    %cst_167 = arith.constant dense<0.000000e+00> : vector<16x32xf32>
    %228 = tpu.matmul %226, %227, %cst_167 {dimension_numbers = #tpu.dot_dimension_numbers<[1], [0], [0], [1], [0, 0, 1, 1], [], []>} : vector<16x32xf32>, vector<32x32xf32>, vector<16x32xf32> -> vector<16x32xf32>
    %c0_168 = arith.constant 0 : index
    %c0_169 = arith.constant 0 : index
    %229 = vector.load %arg13[%c0_168, %c0_169] : memref<1x32xf32, #tpu.memory_space<vmem>>, vector<1x32xf32>
    %230 = vector.broadcast %229 : vector<1x32xf32> to vector<16x32xf32>
    %231 = arith.addf %228, %230 : vector<16x32xf32>
    %cst_170 = arith.constant 0.000000e+00 : f32
    %232 = vector.broadcast %cst_170 : f32 to vector<16x32xf32>
    %233 = arith.maximumf %231, %232 : vector<16x32xf32>
    %c0_171 = arith.constant 0 : index
    %c0_172 = arith.constant 0 : index
    %234 = vector.load %arg14[%c0_171, %c0_172] : memref<32x32xf32, #tpu.memory_space<vmem>>, vector<32x32xf32>
    %cst_173 = arith.constant dense<0.000000e+00> : vector<16x32xf32>
    %235 = tpu.matmul %233, %234, %cst_173 {dimension_numbers = #tpu.dot_dimension_numbers<[1], [0], [0], [1], [0, 0, 1, 1], [], []>} : vector<16x32xf32>, vector<32x32xf32>, vector<16x32xf32> -> vector<16x32xf32>
    %c0_174 = arith.constant 0 : index
    %c0_175 = arith.constant 0 : index
    %236 = vector.load %arg15[%c0_174, %c0_175] : memref<1x32xf32, #tpu.memory_space<vmem>>, vector<1x32xf32>
    %237 = vector.broadcast %236 : vector<1x32xf32> to vector<16x32xf32>
    %238 = arith.addf %235, %237 : vector<16x32xf32>
    %cst_176 = arith.constant 0.000000e+00 : f32
    %239 = vector.broadcast %cst_176 : f32 to vector<16x32xf32>
    %240 = arith.maximumf %238, %239 : vector<16x32xf32>
    %c0_177 = arith.constant 0 : index
    %c0_178 = arith.constant 0 : index
    %241 = vector.load %arg18[%c0_177, %c0_178] : memref<32x128xf32, #tpu.memory_space<vmem>>, vector<32x128xf32>
    %cst_179 = arith.constant dense<0.000000e+00> : vector<16x128xf32>
    %242 = tpu.matmul %226, %241, %cst_179 {dimension_numbers = #tpu.dot_dimension_numbers<[1], [0], [0], [1], [0, 0, 1, 1], [], []>} : vector<16x32xf32>, vector<32x128xf32>, vector<16x128xf32> -> vector<16x128xf32>
    %c0_180 = arith.constant 0 : index
    %c0_181 = arith.constant 0 : index
    %243 = vector.load %arg19[%c0_180, %c0_181] : memref<1x128xf32, #tpu.memory_space<vmem>>, vector<1x128xf32>
    %244 = vector.broadcast %243 : vector<1x128xf32> to vector<16x128xf32>
    %245 = arith.addf %242, %244 : vector<16x128xf32>
    %c0_182 = arith.constant 0 : index
    %c0_183 = arith.constant 0 : index
    %246 = vector.load %arg16[%c0_182, %c0_183] : memref<32x128xf32, #tpu.memory_space<vmem>>, vector<32x128xf32>
    %cst_184 = arith.constant dense<0.000000e+00> : vector<16x128xf32>
    %247 = tpu.matmul %240, %246, %cst_184 {dimension_numbers = #tpu.dot_dimension_numbers<[1], [0], [0], [1], [0, 0, 1, 1], [], []>} : vector<16x32xf32>, vector<32x128xf32>, vector<16x128xf32> -> vector<16x128xf32>
    %248 = arith.addf %245, %247 : vector<16x128xf32>
    %c0_185 = arith.constant 0 : index
    %c0_186 = arith.constant 0 : index
    %249 = vector.load %arg17[%c0_185, %c0_186] : memref<1x128xf32, #tpu.memory_space<vmem>>, vector<1x128xf32>
    %250 = vector.broadcast %249 : vector<1x128xf32> to vector<16x128xf32>
    %251 = arith.addf %248, %250 : vector<16x128xf32>
    %252 = arith.addf %251, %29 : vector<16x128xf32>
    %253 = arith.negf %252 : vector<16x128xf32>
    %254 = math.exp %253 : vector<16x128xf32>
    %cst_187 = arith.constant 1.000000e+00 : f32
    %255 = vector.broadcast %cst_187 : f32 to vector<16x128xf32>
    %256 = arith.addf %255, %254 : vector<16x128xf32>
    %257 = arith.divf %255, %256 : vector<16x128xf32>
    %258 = arith.select %35, %257, %252 : vector<16x128xi1>, vector<16x128xf32>
    %c4_188 = arith.constant 4 : index
    %c0_189 = arith.constant 0 : index
    %c0_190 = arith.constant 0 : index
    %259 = vector.load %arg20[%c4_188, %c0_189, %c0_190] : memref<6x16x128xf32, #tpu.memory_space<vmem>>, vector<1x16x128xf32>
    %260 = vector.shape_cast %259 : vector<1x16x128xf32> to vector<16x128xf32>
    %261 = vector.shape_cast %258 : vector<16x128xf32> to vector<1x16x128xf32>
    tpu.vector_store %arg20[%c4_188, %c0_189, %c0_190], %261 {strides = array<i32>} : memref<6x16x128xf32, #tpu.memory_space<vmem>>, vector<1x16x128xf32>,
    %262 = arith.addf %226, %16 : vector<16x32xf32>
    %c5 = arith.constant 5 : index
    %c0_191 = arith.constant 0 : index
    %c0_192 = arith.constant 0 : index
    %263 = vector.load %arg10[%c5, %c0_191, %c0_192] : memref<6x32x32xf32, #tpu.memory_space<vmem>>, vector<1x32x32xf32>
    %264 = vector.shape_cast %263 : vector<1x32x32xf32> to vector<32x32xf32>
    %cst_193 = arith.constant dense<0.000000e+00> : vector<16x32xf32>
    %265 = tpu.matmul %262, %264, %cst_193 {dimension_numbers = #tpu.dot_dimension_numbers<[1], [0], [0], [1], [0, 0, 1, 1], [], []>} : vector<16x32xf32>, vector<32x32xf32>, vector<16x32xf32> -> vector<16x32xf32>
    %c5_194 = arith.constant 5 : index
    %c0_195 = arith.constant 0 : index
    %c0_196 = arith.constant 0 : index
    %266 = vector.load %arg11[%c5_194, %c0_195, %c0_196] : memref<6x1x32xf32, #tpu.memory_space<vmem>>, vector<1x1x32xf32>
    %267 = vector.shape_cast %266 : vector<1x1x32xf32> to vector<1x32xf32>
    %268 = vector.broadcast %267 : vector<1x32xf32> to vector<16x32xf32>
    %269 = arith.addf %265, %268 : vector<16x32xf32>
    %cst_197 = arith.constant 0.000000e+00 : f32
    %270 = vector.broadcast %cst_197 : f32 to vector<16x32xf32>
    %271 = arith.maximumf %269, %270 : vector<16x32xf32>
    %c0_198 = arith.constant 0 : index
    %c0_199 = arith.constant 0 : index
    %272 = vector.load %arg12[%c0_198, %c0_199] : memref<32x32xf32, #tpu.memory_space<vmem>>, vector<32x32xf32>
    %cst_200 = arith.constant dense<0.000000e+00> : vector<16x32xf32>
    %273 = tpu.matmul %271, %272, %cst_200 {dimension_numbers = #tpu.dot_dimension_numbers<[1], [0], [0], [1], [0, 0, 1, 1], [], []>} : vector<16x32xf32>, vector<32x32xf32>, vector<16x32xf32> -> vector<16x32xf32>
    %c0_201 = arith.constant 0 : index
    %c0_202 = arith.constant 0 : index
    %274 = vector.load %arg13[%c0_201, %c0_202] : memref<1x32xf32, #tpu.memory_space<vmem>>, vector<1x32xf32>
    %275 = vector.broadcast %274 : vector<1x32xf32> to vector<16x32xf32>
    %276 = arith.addf %273, %275 : vector<16x32xf32>
    %cst_203 = arith.constant 0.000000e+00 : f32
    %277 = vector.broadcast %cst_203 : f32 to vector<16x32xf32>
    %278 = arith.maximumf %276, %277 : vector<16x32xf32>
    %c0_204 = arith.constant 0 : index
    %c0_205 = arith.constant 0 : index
    %279 = vector.load %arg14[%c0_204, %c0_205] : memref<32x32xf32, #tpu.memory_space<vmem>>, vector<32x32xf32>
    %cst_206 = arith.constant dense<0.000000e+00> : vector<16x32xf32>
    %280 = tpu.matmul %278, %279, %cst_206 {dimension_numbers = #tpu.dot_dimension_numbers<[1], [0], [0], [1], [0, 0, 1, 1], [], []>} : vector<16x32xf32>, vector<32x32xf32>, vector<16x32xf32> -> vector<16x32xf32>
    %c0_207 = arith.constant 0 : index
    %c0_208 = arith.constant 0 : index
    %281 = vector.load %arg15[%c0_207, %c0_208] : memref<1x32xf32, #tpu.memory_space<vmem>>, vector<1x32xf32>
    %282 = vector.broadcast %281 : vector<1x32xf32> to vector<16x32xf32>
    %283 = arith.addf %280, %282 : vector<16x32xf32>
    %cst_209 = arith.constant 0.000000e+00 : f32
    %284 = vector.broadcast %cst_209 : f32 to vector<16x32xf32>
    %285 = arith.maximumf %283, %284 : vector<16x32xf32>
    %c0_210 = arith.constant 0 : index
    %c0_211 = arith.constant 0 : index
    %286 = vector.load %arg18[%c0_210, %c0_211] : memref<32x128xf32, #tpu.memory_space<vmem>>, vector<32x128xf32>
    %cst_212 = arith.constant dense<0.000000e+00> : vector<16x128xf32>
    %287 = tpu.matmul %271, %286, %cst_212 {dimension_numbers = #tpu.dot_dimension_numbers<[1], [0], [0], [1], [0, 0, 1, 1], [], []>} : vector<16x32xf32>, vector<32x128xf32>, vector<16x128xf32> -> vector<16x128xf32>
    %c0_213 = arith.constant 0 : index
    %c0_214 = arith.constant 0 : index
    %288 = vector.load %arg19[%c0_213, %c0_214] : memref<1x128xf32, #tpu.memory_space<vmem>>, vector<1x128xf32>
    %289 = vector.broadcast %288 : vector<1x128xf32> to vector<16x128xf32>
    %290 = arith.addf %287, %289 : vector<16x128xf32>
    %c0_215 = arith.constant 0 : index
    %c0_216 = arith.constant 0 : index
    %291 = vector.load %arg16[%c0_215, %c0_216] : memref<32x128xf32, #tpu.memory_space<vmem>>, vector<32x128xf32>
    %cst_217 = arith.constant dense<0.000000e+00> : vector<16x128xf32>
    %292 = tpu.matmul %285, %291, %cst_217 {dimension_numbers = #tpu.dot_dimension_numbers<[1], [0], [0], [1], [0, 0, 1, 1], [], []>} : vector<16x32xf32>, vector<32x128xf32>, vector<16x128xf32> -> vector<16x128xf32>
    %293 = arith.addf %290, %292 : vector<16x128xf32>
    %c0_218 = arith.constant 0 : index
    %c0_219 = arith.constant 0 : index
    %294 = vector.load %arg17[%c0_218, %c0_219] : memref<1x128xf32, #tpu.memory_space<vmem>>, vector<1x128xf32>
    %295 = vector.broadcast %294 : vector<1x128xf32> to vector<16x128xf32>
    %296 = arith.addf %293, %295 : vector<16x128xf32>
    %297 = arith.addf %296, %29 : vector<16x128xf32>
    %298 = arith.negf %297 : vector<16x128xf32>
    %299 = math.exp %298 : vector<16x128xf32>
    %cst_220 = arith.constant 1.000000e+00 : f32
    %300 = vector.broadcast %cst_220 : f32 to vector<16x128xf32>
    %301 = arith.addf %300, %299 : vector<16x128xf32>
    %302 = arith.divf %300, %301 : vector<16x128xf32>
    %303 = arith.select %35, %302, %297 : vector<16x128xi1>, vector<16x128xf32>
    %c5_221 = arith.constant 5 : index
    %c0_222 = arith.constant 0 : index
    %c0_223 = arith.constant 0 : index
    %304 = vector.load %arg20[%c5_221, %c0_222, %c0_223] : memref<6x16x128xf32, #tpu.memory_space<vmem>>, vector<1x16x128xf32>
    %305 = vector.shape_cast %304 : vector<1x16x128xf32> to vector<16x128xf32>
    %306 = vector.shape_cast %303 : vector<16x128xf32> to vector<1x16x128xf32>
    tpu.vector_store %arg20[%c5_221, %c0_222, %c0_223], %306 {strides = array<i32>} : memref<6x16x128xf32, #tpu.memory_space<vmem>>, vector<1x16x128xf32>,
    return
  }
  func.func @transform_0(%arg0: i32) -> (i32, i32) {
    %c0_i32 = arith.constant 0 : i32
    %c0_i32_0 = arith.constant 0 : i32
    %c0_i32_1 = arith.constant 0 : i32
    return %c0_i32, %c0_i32_0 : i32, i32
  }
  func.func @transform_1(%arg0: i32) -> (i32, i32) {
    %c0_i32 = arith.constant 0 : i32
    %c0_i32_0 = arith.constant 0 : i32
    %c0_i32_1 = arith.constant 0 : i32
    return %c0_i32, %c0_i32_0 : i32, i32
  }
  func.func @transform_2(%arg0: i32) -> (i32, i32) {
    %c0_i32 = arith.constant 0 : i32
    %c0_i32_0 = arith.constant 0 : i32
    %c0_i32_1 = arith.constant 0 : i32
    return %c0_i32, %c0_i32_0 : i32, i32
  }
  func.func @transform_3(%arg0: i32) -> (i32, i32) {
    %c0_i32 = arith.constant 0 : i32
    %c0_i32_0 = arith.constant 0 : i32
    %c0_i32_1 = arith.constant 0 : i32
    return %c0_i32, %c0_i32_0 : i32, i32
  }
  func.func @transform_4(%arg0: i32) -> (i32, i32) {
    %c0_i32 = arith.constant 0 : i32
    %c0_i32_0 = arith.constant 0 : i32
    %c0_i32_1 = arith.constant 0 : i32
    return %c0_i32, %c0_i32_0 : i32, i32
  }
  func.func @transform_5(%arg0: i32) -> (i32, i32) {
    %c0_i32 = arith.constant 0 : i32
    %c0_i32_0 = arith.constant 0 : i32
    %c0_i32_1 = arith.constant 0 : i32
    return %c0_i32, %c0_i32_0 : i32, i32
  }
  func.func @transform_6(%arg0: i32) -> (i32, i32) {
    %c0_i32 = arith.constant 0 : i32
    %c0_i32_0 = arith.constant 0 : i32
    %c0_i32_1 = arith.constant 0 : i32
    return %c0_i32, %c0_i32_0 : i32, i32
  }
  func.func @transform_7(%arg0: i32) -> (i32, i32) {
    %c0_i32 = arith.constant 0 : i32
    %c0_i32_0 = arith.constant 0 : i32
    %c0_i32_1 = arith.constant 0 : i32
    return %c0_i32, %c0_i32_0 : i32, i32
  }
  func.func @transform_8(%arg0: i32) -> (i32, i32) {
    %c0_i32 = arith.constant 0 : i32
    %c0_i32_0 = arith.constant 0 : i32
    %c0_i32_1 = arith.constant 0 : i32
    return %c0_i32, %c0_i32_0 : i32, i32
  }
  func.func @transform_9(%arg0: i32) -> (i32, i32, i32) {
    %c0_i32 = arith.constant 0 : i32
    %c0_i32_0 = arith.constant 0 : i32
    %c0_i32_1 = arith.constant 0 : i32
    %c0_i32_2 = arith.constant 0 : i32
    return %c0_i32, %c0_i32_0, %c0_i32_1 : i32, i32, i32
  }
  func.func @transform_10(%arg0: i32) -> (i32, i32, i32) {
    %c0_i32 = arith.constant 0 : i32
    %c0_i32_0 = arith.constant 0 : i32
    %c0_i32_1 = arith.constant 0 : i32
    %c0_i32_2 = arith.constant 0 : i32
    return %c0_i32, %c0_i32_0, %c0_i32_1 : i32, i32, i32
  }
  func.func @transform_11(%arg0: i32) -> (i32, i32) {
    %c0_i32 = arith.constant 0 : i32
    %c0_i32_0 = arith.constant 0 : i32
    %c0_i32_1 = arith.constant 0 : i32
    return %c0_i32, %c0_i32_0 : i32, i32
  }
  func.func @transform_12(%arg0: i32) -> (i32, i32) {
    %c0_i32 = arith.constant 0 : i32
    %c0_i32_0 = arith.constant 0 : i32
    %c0_i32_1 = arith.constant 0 : i32
    return %c0_i32, %c0_i32_0 : i32, i32
  }
  func.func @transform_13(%arg0: i32) -> (i32, i32) {
    %c0_i32 = arith.constant 0 : i32
    %c0_i32_0 = arith.constant 0 : i32
    %c0_i32_1 = arith.constant 0 : i32
    return %c0_i32, %c0_i32_0 : i32, i32
  }
  func.func @transform_14(%arg0: i32) -> (i32, i32) {
    %c0_i32 = arith.constant 0 : i32
    %c0_i32_0 = arith.constant 0 : i32
    %c0_i32_1 = arith.constant 0 : i32
    return %c0_i32, %c0_i32_0 : i32, i32
  }
  func.func @transform_15(%arg0: i32) -> (i32, i32) {
    %c0_i32 = arith.constant 0 : i32
    %c0_i32_0 = arith.constant 0 : i32
    %c0_i32_1 = arith.constant 0 : i32
    return %c0_i32, %c0_i32_0 : i32, i32
  }
  func.func @transform_16(%arg0: i32) -> (i32, i32) {
    %c0_i32 = arith.constant 0 : i32
    %c0_i32_0 = arith.constant 0 : i32
    %c0_i32_1 = arith.constant 0 : i32
    return %c0_i32, %c0_i32_0 : i32, i32
  }
  func.func @transform_17(%arg0: i32) -> (i32, i32) {
    %c0_i32 = arith.constant 0 : i32
    %c0_i32_0 = arith.constant 0 : i32
    %c0_i32_1 = arith.constant 0 : i32
    return %c0_i32, %c0_i32_0 : i32, i32
  }
  func.func @transform_18(%arg0: i32) -> (i32, i32) {
    %c0_i32 = arith.constant 0 : i32
    %c0_i32_0 = arith.constant 0 : i32
    %c0_i32_1 = arith.constant 0 : i32
    return %c0_i32, %c0_i32_0 : i32, i32
  }
  func.func @transform_19(%arg0: i32) -> (i32, i32, i32) {
    %c0_i32 = arith.constant 0 : i32
    %c0_i32_0 = arith.constant 0 : i32
    %c0_i32_1 = arith.constant 0 : i32
    %c0_i32_2 = arith.constant 0 : i32
    return %c0_i32, %c0_i32_0, %c0_i32_1 : i32, i32, i32
  }
}

</mosaic_0001>

<bundles_post_ra>
// kernel: dab_detr_forward.1
= control target key start
LH: loop header
LB: loop body
LE: loop exit
PB: predicated region body
PF: predicated region fallthrough
CT: control target
= control target key end

     0   :  { %vm86_vm0 = vcmask 64512   ;;  %vm305_vm1 = vcmask 130048   ;;  %vm648_vm2 = vcmask 261120   ;;  %s5531_s5 = inlined_call_operand.vmem [shape: f32[8,16], index: 5, kind: input, shape index: {}]   ;;  %s5532_s0 = inlined_call_operand.vmem [shape: f32[128,8], index: 0, kind: input, shape index: {}]   ;;  %s5533_s7 = inlined_call_operand.vmem [shape: f32[16,32], index: 7, kind: input, shape index: {}]   ;;  %s5534_s6 = inlined_call_operand.vmem [shape: f32[1,16], index: 6, kind: input, shape index: {}]   ;;  %s5535_s2 = inlined_call_operand.vmem [shape: f32[16,128], index: 2, kind: input, shape index: {}]   ;;  %s5536_s8 = inlined_call_operand.vmem [shape: f32[1,32], index: 8, kind: input, shape index: {}]   ;;  %s5537_s1 = inlined_call_operand.vmem [shape: f32[128,32], index: 1, kind: input, shape index: {}]   ;;  %s5538_s9 = inlined_call_operand.vmem [shape: f32[6,32,32], index: 9, kind: input, shape index: {}]   ;;  %s5539_s11 = inlined_call_operand.vmem [shape: f32[32,32], index: 11, kind: input, shape index: {}]   ;;  %s5540_s3 = inlined_call_operand.vmem [shape: f32[16,32], index: 3, kind: input, shape index: {}]   ;;  %s5541_s17 = inlined_call_operand.vmem [shape: f32[32,128], index: 17, kind: input, shape index: {}]   ;;  %s5542_s13 = inlined_call_operand.vmem [shape: f32[32,32], index: 13, kind: input, shape index: {}]   ;;  %s5543_s10 = inlined_call_operand.vmem [shape: f32[6,1,32], index: 10, kind: input, shape index: {}]   ;;  %s5544_s15 = inlined_call_operand.vmem [shape: f32[32,128], index: 15, kind: input, shape index: {}]   ;;  %s5545_s12 = inlined_call_operand.vmem [shape: f32[1,32], index: 12, kind: input, shape index: {}]   ;;  %s5546_s14 = inlined_call_operand.vmem [shape: f32[1,32], index: 14, kind: input, shape index: {}]   ;;  %s5547_s4 = inlined_call_operand.vmem [shape: f32[16,128], index: 4, kind: input, shape index: {}]   ;;  %s5548_s18 = inlined_call_operand.vmem [shape: f32[1,128], index: 18, kind: input, shape index: {}]   ;;  %s5549_s16 = inlined_call_operand.vmem [shape: f32[1,128], index: 16, kind: input, shape index: {}]   ;;  %s5550_s19 = inlined_call_operand.vmem [shape: f32[6,16,128], index: 19, kind: output, shape index: {}]  }
   0x1   :  { %5553 = sst [smem:[#allocation2_spill]] %s5531_s5 }
   0x2   :  { %5554 = sst [smem:[#allocation3_spill]] %s5532_s0  ;;  %s5557_s20 = sld [smem:[#allocation2_spill]] }
   0x3   :  { %5555 = sst [smem:[#allocation4_spill]] %s5533_s7  ;;  %s5558_s22 = sld [smem:[#allocation3_spill]] }
   0x4   :  { %5556 = sst [smem:[#allocation5_spill]] %s5534_s6  ;;  %s5559_s6 = sld [smem:[#allocation4_spill]] }
   0x5   :  { %s5560_s5 = sld [smem:[#allocation5_spill]] }
   0x8   :  { %v78_v0 = vld [vmem:[%s5557_s20] sm:$0xff] }
   0x9   :  { %v62_v1 = vld [vmem:[%s5558_s22] sm:$0xff]  ;;  %v63_v2 = vld [vmem:[%s5558_s22 + $0x8] sm:$0xff]  ;;  %3963 = vmatprep.subr.mxu0 %v78_v0  ;;  %v64_v3 = vld [vmem:[%s5558_s22 + $0x10] sm:$0xff] }
   0xa   :  { %3965 = vmatprep.mubr.msk.f32.mxu0 %vm86_vm0, %v62_v1  ;;  %3964 = vmatpush3.msra.mxu0 %v78_v0  ;;  %v65_v4 = vld [vmem:[%s5558_s22 + $0x18] sm:$0xff]  ;;  %v66_v5 = vld [vmem:[%s5558_s22 + $0x20] sm:$0xff]  ;;  %v67_v6 = vld [vmem:[%s5558_s22 + $0x28] sm:$0xff] }
   0xb   :  { %3966 = vmatmul.mubr.msk.f32.vlgmr.msra.gmra.mrb[0].mxu0 %vm86_vm0, %v63_v2  ;;  %v68_v7 = vld [vmem:[%s5558_s22 + $0x30] sm:$0xff]  ;;  %v69_v8 = vld [vmem:[%s5558_s22 + $0x38] sm:$0xff]  ;;  %v70_v9 = vld [vmem:[%s5558_s22 + $0x40] sm:$0xff] }
   0xc   :  { %3968 = vmatprep.mubr.msk.f32.mxu0 %vm86_vm0, %v64_v3  ;;  %v71_v10 = vld [vmem:[%s5558_s22 + $0x48] sm:$0xff]  ;;  %v72_v11 = vld [vmem:[%s5558_s22 + $0x50] sm:$0xff]  ;;  %v73_v12 = vld [vmem:[%s5558_s22 + $0x58] sm:$0xff] }
   0xd   :  { %v74_v13 = vld [vmem:[%s5558_s22 + $0x60] sm:$0xff]  ;;  %v75_v14 = vld [vmem:[%s5558_s22 + $0x68] sm:$0xff]  ;;  %v76_v15 = vld [vmem:[%s5558_s22 + $0x70] sm:$0xff] }
   0xe   :  { %v77_v16 = vld [vmem:[%s5558_s22 + $0x78] sm:$0xff]  ;;  %v296_v17 = vld [vmem:[%s5559_s6] sm:$0xff]  ;;  %v297_v18 = vld [vmem:[%s5559_s6 + $0x8] sm:$0xff] }
   0xf   :  { %3969 = vmatmul.mubr.msk.f32.gmra.mrb[2].mxu0 %vm86_vm0, %v65_v4  ;;  %v4382_v19 = vpack.c.bf16 %v297_v18, %v296_v17  ;;  %v3559_v20 = vld [vmem:[%s5560_s5] ss:$0 sm:$0xff] }
  0x10   :  { %3971 = vmatprep.mubr.msk.f32.mxu0 %vm86_vm0, %v66_v5  ;;  %v531_v5 = vld [vmem:[%s5535_s2] sm:$0xff] }
  0x11   :  { %4383 = vmatprep.subr.bf16.mxu1 %v4382_v19 }
  0x12   :  { %4385 = vmatpush3.bf16.msra.mxu1 %v4382_v19  ;;  %v501_v19 = vld [vmem:[%s5537_s1 + $0x10] sm:$0xff] }
  0x13   :  { %3972 = vmatmul.mubr.msk.f32.gmra.mrb[4].mxu0 %vm86_vm0, %v67_v6  ;;  %v4936_v6 = vld [vmem:[%s5536_s8] ss:$0 sm:$0xff] }
  0x14   :  { %3974 = vmatprep.mubr.msk.f32.mxu0 %vm86_vm0, %v68_v7 }
  0x17   :  { %3975 = vmatmul.mubr.msk.f32.gmra.mrb[6].mxu0 %vm86_vm0, %v69_v8  ;;  %v500_v8 = vld [vmem:[%s5537_s1 + $0x8] sm:$0xff] }
  0x18   :  { %3977 = vmatprep.mubr.msk.f32.mxu0 %vm86_vm0, %v70_v9 }
  0x1b   :  { %3978 = vmatmul.mubr.msk.f32.gmra.mrb[8].mxu0 %vm86_vm0, %v71_v10 }
  0x1c   :  { %3980 = vmatprep.mubr.msk.f32.mxu0 %vm86_vm0, %v72_v11  ;;  %v499_v11 = vld [vmem:[%s5537_s1] sm:$0xff] }
  0x1f   :  { %3981 = vmatmul.mubr.msk.f32.gmra.mrb[10].mxu0 %vm86_vm0, %v73_v12 }
  0x20   :  { %3983 = vmatprep.mubr.msk.f32.mxu0 %vm86_vm0, %v74_v13 }
  0x23   :  { %3984 = vmatmul.mubr.msk.f32.gmra.mrb[12].mxu0 %vm86_vm0, %v75_v14 }
  0x24   :  { %3986 = vmatprep.mubr.msk.f32.mxu0 %vm86_vm0, %v76_v15 }
  0x27   :  { %3987 = vmatmul.mubr.msk.f32.gmra.mrb[14].mxu0 %vm86_vm0, %v77_v16  ;;  %v502_v16 = vld [vmem:[%s5537_s1 + $0x18] sm:$0xff] }
  0x28   :  { %4049 = vmatprep.mubr.f32.mxu0 %v531_v5 }
  0xde   :  { %v3967_v21 = vpop.f32.mrb[0].mxu0 }
  0xdf   :  { %v207_v22 = vadd.f32 %v3967_v21, %v3559_v20  ;;  %v201_v23 = vpop.f32.mrb[1].mxu0 }
  0xe0   :  { %v202_v24 = vadd.f32 %v3559_v20, %v201_v23 }
  0xe1   :  { %v281_v27 = vmax.f32 %v207_v22, 0.0 }
  0xe2   :  { %v280_v25 = vmax.f32 %v202_v24, 0.0  ;;  %v3970_v26 = vpop.f32.mrb[2].mxu0 }
  0xe3   :  { %v217_v28 = vadd.f32 %v3970_v26, %v3559_v20  ;;  %v211_v29 = vpop.f32.mrb[3].mxu0 }
  0xe4   :  { %v212_v30 = vadd.f32 %v3559_v20, %v211_v29  ;;  %3993 = vmatprep.mubr.msk.f32.mxu1 %vm305_vm1, %v280_v25  ;;  %v504_v25 = vld [vmem:[%s5537_s1 + $0x28] sm:$0xff] }
  0xe5   :  { %3994 = vmatmul.mubr.msk.f32.vlgmr.msra.gmra.mrb[0].mxu1 %vm305_vm1, %v281_v27  ;;  %v283_v33 = vmax.f32 %v217_v28, 0.0  ;;  %v503_v28 = vld [vmem:[%s5537_s1 + $0x20] sm:$0xff] }
  0xe6   :  { %v282_v31 = vmax.f32 %v212_v30, 0.0  ;;  %v3973_v32 = vpop.f32.mrb[4].mxu0 }
  0xe7   :  { %v227_v34 = vadd.f32 %v3973_v32, %v3559_v20  ;;  %v221_v35 = vpop.f32.mrb[5].mxu0 }
  0xe8   :  { %v222_v36 = vadd.f32 %v3559_v20, %v221_v35  ;;  %3996 = vmatprep.mubr.msk.f32.mxu1 %vm305_vm1, %v282_v31 }
  0xe9   :  { %3997 = vmatmul.mubr.msk.f32.gmra.mrb[2].mxu1 %vm305_vm1, %v283_v33  ;;  %v285_v39 = vmax.f32 %v227_v34, 0.0  ;;  %v506_v34 = vld [vmem:[%s5537_s1 + $0x38] sm:$0xff] }
  0xea   :  { %v284_v37 = vmax.f32 %v222_v36, 0.0  ;;  %v3976_v38 = vpop.f32.mrb[6].mxu0 }
  0xeb   :  { %v237_v40 = vadd.f32 %v3976_v38, %v3559_v20  ;;  %v231_v41 = vpop.f32.mrb[7].mxu0 }
  0xec   :  { %v232_v42 = vadd.f32 %v3559_v20, %v231_v41  ;;  %3999 = vmatprep.mubr.msk.f32.mxu1 %vm305_vm1, %v284_v37  ;;  %v505_v37 = vld [vmem:[%s5537_s1 + $0x30] sm:$0xff] }
  0xed   :  { %4000 = vmatmul.mubr.msk.f32.gmra.mrb[4].mxu1 %vm305_vm1, %v285_v39  ;;  %v287_v45 = vmax.f32 %v237_v40, 0.0 }
  0xee   :  { %v286_v43 = vmax.f32 %v232_v42, 0.0  ;;  %v3979_v44 = vpop.f32.mrb[8].mxu0 }
  0xef   :  { %v247_v46 = vadd.f32 %v3979_v44, %v3559_v20  ;;  %v241_v47 = vpop.f32.mrb[9].mxu0 }
  0xf0   :  { %v242_v48 = vadd.f32 %v3559_v20, %v241_v47  ;;  %4002 = vmatprep.mubr.msk.f32.mxu1 %vm305_vm1, %v286_v43  ;;  %v508_v43 = vld [vmem:[%s5537_s1 + $0x48] sm:$0xff] }
  0xf1   :  { %4003 = vmatmul.mubr.msk.f32.gmra.mrb[6].mxu1 %vm305_vm1, %v287_v45  ;;  %v289_v51 = vmax.f32 %v247_v46, 0.0  ;;  %v507_v46 = vld [vmem:[%s5537_s1 + $0x40] sm:$0xff] }
  0xf2   :  { %v288_v49 = vmax.f32 %v242_v48, 0.0  ;;  %v3982_v50 = vpop.f32.mrb[10].mxu0 }
  0xf3   :  { %v257_v52 = vadd.f32 %v3982_v50, %v3559_v20  ;;  %v251_v53 = vpop.f32.mrb[11].mxu0 }
  0xf4   :  { %v252_v54 = vadd.f32 %v3559_v20, %v251_v53  ;;  %4005 = vmatprep.mubr.msk.f32.mxu1 %vm305_vm1, %v288_v49 }
  0xf5   :  { %4006 = vmatmul.mubr.msk.f32.gmra.mrb[8].mxu1 %vm305_vm1, %v289_v51  ;;  %v291_v57 = vmax.f32 %v257_v52, 0.0  ;;  %v510_v52 = vld [vmem:[%s5537_s1 + $0x58] sm:$0xff] }
  0xf6   :  { %v290_v55 = vmax.f32 %v252_v54, 0.0  ;;  %v3985_v56 = vpop.f32.mrb[12].mxu0 }
  0xf7   :  { %v267_v58 = vadd.f32 %v3985_v56, %v3559_v20  ;;  %v261_v59 = vpop.f32.mrb[13].mxu0 }
  0xf8   :  { %v262_v60 = vadd.f32 %v3559_v20, %v261_v59  ;;  %4008 = vmatprep.mubr.msk.f32.mxu1 %vm305_vm1, %v290_v55  ;;  %v509_v55 = vld [vmem:[%s5537_s1 + $0x50] sm:$0xff] }
  0xf9   :  { %4009 = vmatmul.mubr.msk.f32.gmra.mrb[10].mxu1 %vm305_vm1, %v291_v57  ;;  %v293_v63 = vmax.f32 %v267_v58, 0.0 }
  0xfa   :  { %v292_v61 = vmax.f32 %v262_v60, 0.0  ;;  %v3988_v62 = vpop.f32.mrb[14].mxu0 }
  0xfb   :  { %v277_v0 = vadd.f32 %v3988_v62, %v3559_v20  ;;  %v271_v1 = vpop.f32.mrb[15].mxu0 }
  0xfc   :  { %v272_v2 = vadd.f32 %v3559_v20, %v271_v1  ;;  %4011 = vmatprep.mubr.msk.f32.mxu1 %vm305_vm1, %v292_v61  ;;  %v512_v61 = vld [vmem:[%s5537_s1 + $0x68] sm:$0xff] }
  0xfd   :  { %4012 = vmatmul.mubr.msk.f32.gmra.mrb[12].mxu1 %vm305_vm1, %v293_v63  ;;  %v295_v4 = vmax.f32 %v277_v0, 0.0  ;;  %v511_v0 = vld [vmem:[%s5537_s1 + $0x60] sm:$0xff] }
  0xfe   :  { %v294_v3 = vmax.f32 %v272_v2, 0.0 }
 0x100   :  { %4014 = vmatprep.mubr.msk.f32.mxu1 %vm305_vm1, %v294_v3 }
 0x101   :  { %4015 = vmatmul.mubr.msk.f32.gmra.mrb[14].mxu1 %vm305_vm1, %v295_v4 }
 0x1b8   :  { %v3995_v7 = vpop.f32.mrb[0].mxu1 }
 0x1b9   :  { %v426_v9 = vadd.f32 %v3995_v7, %v4936_v6  ;;  %v420_v10 = vpop.f32.mrb[1].mxu1  ;;  %v514_v7 = vld [vmem:[%s5537_s1 + $0x78] sm:$0xff] }
 0x1ba   :  { %v421_v12 = vadd.f32 %v4936_v6, %v420_v10  ;;  %v513_v10 = vld [vmem:[%s5537_s1 + $0x70] sm:$0xff] }
 0x1bb   :  { %v516_v13 = vadd.f32 %v500_v8, %v426_v9 }
 0x1bc   :  { %v515_v14 = vadd.f32 %v499_v11, %v421_v12  ;;  %v3998_v15 = vpop.f32.mrb[2].mxu1 }
 0x1bd   :  { %v436_v17 = vadd.f32 %v3998_v15, %v4936_v6  ;;  %v430_v18 = vpop.f32.mrb[3].mxu1  ;;  %v638_v15 = vld [vmem:[%s5538_s9 + $0x8] sm:$0xff] }
 0x1be   :  { %v431_v20 = vadd.f32 %v4936_v6, %v430_v18  ;;  %v4386_v21 = vpack.c.bf16 %v516_v13, %v515_v14  ;;  %v637_v14 = vld [vmem:[%s5538_s9] sm:$0xff] }
 0x1bf   :  { %v518_v22 = vadd.f32 %v502_v16, %v436_v17  ;;  %v4418_v18 = vpack.c.bf16 %v638_v15, %v637_v14 }
 0x1c0   :  { %v517_v23 = vadd.f32 %v501_v19, %v431_v20  ;;  %v4001_v24 = vpop.f32.mrb[4].mxu1  ;;  %4387 = vmatprep.subr.bf16.mxu0 %v4386_v21  ;;  %v639_v19 = vld [vmem:[%s5538_s9 + $0x10] sm:$0xff]  ;;  %v640_v20 = vld [vmem:[%s5538_s9 + $0x18] sm:$0xff] }
 0x1c1   :  { %v446_v26 = vadd.f32 %v4001_v24, %v4936_v6  ;;  %v440_v27 = vpop.f32.mrb[5].mxu1  ;;  %4389 = vmatpush3.bf16.msra.mxu0 %v4386_v21  ;;  %v4422_v21 = vpack.c.bf16 %v640_v20, %v639_v19 }
 0x1c2   :  { %v441_v29 = vadd.f32 %v4936_v6, %v440_v27  ;;  %v4390_v30 = vpack.c.bf16 %v518_v22, %v517_v23  ;;  %v732_v22 = vld [vmem:[%s5539_s11] sm:$0xff]  ;;  %v733_v23 = vld [vmem:[%s5539_s11 + $0x8] sm:$0xff] }
 0x1c3   :  { %v520_v31 = vadd.f32 %v504_v25, %v446_v26  ;;  %v5023_v24 = vpack.c.bf16 %v733_v23, %v732_v22  ;;  %v633_v25 = vld [vmem:[%s5540_s3] sm:$0xff]  ;;  %v634_v27 = vld [vmem:[%s5540_s3 + $0x8] sm:$0xff] }
 0x1c4   :  { %v519_v32 = vadd.f32 %v503_v28, %v441_v29  ;;  %v4004_v33 = vpop.f32.mrb[6].mxu1  ;;  %4391 = vmatprep.subr.bf16.mxu0 %v4390_v30 }
 0x1c5   :  { %v456_v35 = vadd.f32 %v4004_v33, %v4936_v6  ;;  %v450_v36 = vpop.f32.mrb[7].mxu1  ;;  %4393 = vmatpush3.bf16.msra.mxu0 %v4390_v30 }
 0x1c6   :  { %v451_v38 = vadd.f32 %v4936_v6, %v450_v36  ;;  %v4394_v39 = vpack.c.bf16 %v520_v31, %v519_v32  ;;  %v734_v31 = vld [vmem:[%s5539_s11 + $0x10] sm:$0xff]  ;;  %v735_v32 = vld [vmem:[%s5539_s11 + $0x18] sm:$0xff] }
 0x1c7   :  { %v522_v40 = vadd.f32 %v506_v34, %v456_v35  ;;  %v5047_v33 = vpack.c.bf16 %v735_v32, %v734_v31  ;;  %v920_v34 = vld [vmem:[%s5541_s17] sm:$0xff]  ;;  %v921_v35 = vld [vmem:[%s5541_s17 + $0x8] sm:$0xff] }
 0x1c8   :  { %v521_v41 = vadd.f32 %v505_v37, %v451_v38  ;;  %v4007_v42 = vpop.f32.mrb[8].mxu1  ;;  %4395 = vmatprep.subr.bf16.mxu0 %v4394_v39  ;;  %v5057_v36 = vpack.c.bf16 %v921_v35, %v920_v34  ;;  %v826_v37 = vld [vmem:[%s5542_s13] sm:$0xff]  ;;  %v827_v38 = vld [vmem:[%s5542_s13 + $0x8] sm:$0xff] }
 0x1c9   :  { %v466_v44 = vadd.f32 %v4007_v42, %v4936_v6  ;;  %v460_v45 = vpop.f32.mrb[9].mxu1  ;;  %4397 = vmatpush3.bf16.msra.mxu0 %v4394_v39  ;;  %v828_v39 = vld [vmem:[%s5542_s13 + $0x10] sm:$0xff]  ;;  %v609_v32 = vld [vmem:[%s5547_s4 + $0x8] sm:$0xff]  ;;  %v608_v34 = vld [vmem:[%s5547_s4] sm:$0xff] }
 0x1ca   :  { %v461_v47 = vadd.f32 %v4936_v6, %v460_v45  ;;  %v4398_v48 = vpack.c.bf16 %v522_v40, %v521_v41  ;;  %v5069_v40 = vpack.c.bf16 %v827_v38, %v826_v37  ;;  %v829_v41 = vld [vmem:[%s5542_s13 + $0x18] sm:$0xff]  ;;  %v611_v35 = vmax.f32 %v609_v32, 0.0 }
 0x1cb   :  { %v524_v49 = vadd.f32 %v508_v43, %v466_v44  ;;  %v5074_v42 = vpack.c.bf16 %v829_v41, %v828_v39  ;;  %v3593_v43 = vld [vmem:[%s5543_s10] ss:$0 sm:$0xff]  ;;  %v610_v37 = vmax.f32 %v608_v34, 0.0 }
 0x1cc   :  { %v523_v50 = vadd.f32 %v507_v46, %v461_v47  ;;  %v4010_v51 = vpop.f32.mrb[10].mxu1  ;;  %4399 = vmatprep.subr.bf16.mxu0 %v4398_v48  ;;  %4435 = vmatprep.subr.bf16.mxu1 %v5069_v40  ;;  %v613_v38 = vmin.f32 %v611_v35, 1.0 }
 0x1cd   :  { %v476_v53 = vadd.f32 %v4010_v51, %v4936_v6  ;;  %v470_v54 = vpop.f32.mrb[11].mxu1  ;;  %4401 = vmatpush3.bf16.msra.mxu0 %v4398_v48  ;;  %4437 = vmatpush3.bf16.msra.mxu1 %v5069_v40  ;;  %v922_v48 = vld [vmem:[%s5541_s17 + $0x10] sm:$0xff]  ;;  %v612_v39 = vmin.f32 %v610_v37, 1.0 }
 0x1ce   :  { %v471_v56 = vadd.f32 %v4936_v6, %v470_v54  ;;  %v4402_v57 = vpack.c.bf16 %v524_v49, %v523_v50  ;;  %4439 = vmatprep.subr.bf16.mxu1 %v5074_v42  ;;  %v923_v49 = vld [vmem:[%s5541_s17 + $0x18] sm:$0xff]  ;;  %v617_v41 = vsub.f32 1.0, %v613_v38 }
 0x1cf   :  { %v526_v58 = vadd.f32 %v510_v52, %v476_v53  ;;  %v5090_v53 = vpack.c.bf16 %v923_v49, %v922_v48  ;;  %v614_v48 = vmax.f32 %v612_v39, 0.001 }
 0x1d0   :  { %v525_v59 = vadd.f32 %v509_v55, %v471_v56  ;;  %v4013_v60 = vpop.f32.mrb[12].mxu1  ;;  %4403 = vmatprep.subr.bf16.mxu0 %v4402_v57  ;;  %v3610_v55 = vld [vmem:[%s5538_s9 + $0x20] sm:$0xff]  ;;  %v3611_v56 = vld [vmem:[%s5538_s9 + $0x28] sm:$0xff] }
 0x1d1   :  { %v486_v62 = vadd.f32 %v4013_v60, %v4936_v6  ;;  %v480_v63 = vpop.f32.mrb[13].mxu1  ;;  %4405 = vmatpush3.bf16.msra.mxu0 %v4402_v57  ;;  %4441 = vmatpush3.bf16.msra.mxu1 %v5074_v42  ;;  %v4458_v57 = vpack.c.bf16 %v3611_v56, %v3610_v55 }
 0x1d2   :  { %v481_v1 = vadd.f32 %v4936_v6, %v480_v63  ;;  %v4406_v2 = vpack.c.bf16 %v526_v58, %v525_v59  ;;  %v1006_v58 = vld [vmem:[%s5544_s15] sm:$0xff]  ;;  %v1007_v59 = vld [vmem:[%s5544_s15 + $0x8] sm:$0xff] }
 0x1d3   :  { %v528_v3 = vadd.f32 %v512_v61, %v486_v62  ;;  %4459 = vmatprep.subr.bf16.mxu1 %v4458_v57  ;;  %v5112_v60 = vpack.c.bf16 %v1007_v59, %v1006_v58  ;;  %v5119_v61 = vld [vmem:[%s5545_s12] ss:$0 sm:$0xff] }
 0x1d4   :  { %v527_v4 = vadd.f32 %v511_v0, %v481_v1  ;;  %v4016_v5 = vpop.f32.mrb[14].mxu1  ;;  %4407 = vmatprep.subr.bf16.mxu0 %v4406_v2 }
 0x1d5   :  { %v496_v8 = vadd.f32 %v4016_v5, %v4936_v6  ;;  %v490_v9 = vpop.f32.mrb[15].mxu1  ;;  %4409 = vmatpush3.bf16.msra.mxu0 %v4406_v2  ;;  %v3612_v2 = vld [vmem:[%s5538_s9 + $0x30] sm:$0xff] }
 0x1d6   :  { %v491_v11 = vadd.f32 %v4936_v6, %v490_v9  ;;  %v4410_v12 = vpack.c.bf16 %v528_v3, %v527_v4  ;;  %v532_v6 = vld [vmem:[%s5535_s2 + $0x8] sm:$0xff]  ;;  %v3613_v3 = vld [vmem:[%s5538_s9 + $0x38] sm:$0xff] }
 0x1d7   :  { %v530_v13 = vadd.f32 %v514_v7, %v496_v8  ;;  %v4462_v7 = vpack.c.bf16 %v3613_v3, %v3612_v2  ;;  %v1008_v8 = vld [vmem:[%s5544_s15 + $0x10] sm:$0xff]  ;;  %v1009_v9 = vld [vmem:[%s5544_s15 + $0x18] sm:$0xff] }
 0x1d8   :  { %v529_v16 = vadd.f32 %v513_v10, %v491_v11  ;;  %4411 = vmatprep.subr.bf16.mxu0 %v4410_v12  ;;  %v5144_v10 = vpack.c.bf16 %v1009_v9, %v1008_v8  ;;  %v5152_v11 = vld [vmem:[%s5546_s14] ss:$0 sm:$0xff] }
 0x1d9   :  { %4413 = vmatpush3.bf16.msra.mxu0 %v4410_v12 }
 0x1da   :  { %v4414_v17 = vpack.c.bf16 %v530_v13, %v529_v16 }
 0x1dc   :  { %4415 = vmatprep.subr.bf16.mxu0 %v4414_v17 }
 0x1dd   :  { %4417 = vmatpush3.bf16.msra.mxu0 %v4414_v17 }
 0x1de   :  { %4419 = vmatprep.subr.bf16.mxu0 %v4418_v18 }
 0x1e0   :  { %4050 = vmatmul.mubr.f32.vlgmr.msra.gmra.mrb[16].mxu0 %v532_v6 }
 0x1e1   :  { %4421 = vmatpush3.bf16.msra.mxu0 %v4418_v18  ;;  %v3615_v18 = vld [vmem:[%s5543_s10 + $0x1] ss:$0 sm:$0xff] }
 0x1e2   :  { %4423 = vmatprep.subr.bf16.mxu0 %v4422_v21 }
 0x1e5   :  { %4425 = vmatpush3.bf16.msra.mxu0 %v4422_v21 }
 0x1e6   :  { %4427 = vmatprep.subr.bf16.mxu0 %v5023_v24 }
 0x2b3   :  { %v5029_v26 = vpop.f32.mrb[16].mxu0 }
 0x2b4   :  { %v5034_v28 = vpop.f32.mrb[17].mxu0  ;;  %v636_v30 = vadd.f32 %v5029_v26, %v634_v27 }
 0x2b5   :  { %v635_v29 = vadd.f32 %v633_v25, %v5034_v28 }
 0x2b7   :  { %4060 = vmatprep.mubr.msk.f32.mxu0 %vm648_vm2, %v635_v29  ;;  %v3634_v29 = vld [vmem:[%s5538_s9 + $0x40] sm:$0xff] }
 0x2b8   :  { %4061 = vmatmul.mubr.msk.f32.vlgmr.msra.gmra.mrb[18].mxu0 %vm648_vm2, %v636_v30  ;;  %v3635_v30 = vld [vmem:[%s5538_s9 + $0x48] sm:$0xff] }
 0x2b9   :  { %4429 = vmatpush3.bf16.msra.mxu0 %v5023_v24  ;;  %v4498_v31 = vpack.c.bf16 %v3635_v30, %v3634_v29 }
 0x2ba   :  { %4431 = vmatprep.subr.bf16.mxu0 %v5047_v33 }
 0x2bd   :  { %4433 = vmatpush3.bf16.msra.mxu0 %v5047_v33 }
 0x2be   :  { %4443 = vmatprep.subr.bf16.mxu0 %v5057_v36 }
 0x38b   :  { %v4062_v44 = vpop.f32.mrb[18].mxu0 }
 0x38c   :  { %v727_v45 = vadd.f32 %v4062_v44, %v3593_v43  ;;  %v721_v46 = vpop.f32.mrb[19].mxu0  ;;  %v619_v44 = vmax.f32 %v617_v41, 0.001  ;;  %v3639_v41 = vld [vmem:[%s5543_s10 + $0x2] ss:$0 sm:$0xff] }
 0x38d   :  { %v722_v47 = vadd.f32 %v3593_v43, %v721_v46  ;;  %v616_v43 = vsub.f32 1.0, %v612_v39  ;;  %v615_v46 = vmax.f32 %v613_v38, 0.001 }
 0x38e   :  { %v731_v50 = vmax.f32 %v727_v45, 0.0  ;;  %4682 = vrcp.f32 %v619_v44 }
 0x38f   :  { %v730_v51 = vmax.f32 %v722_v47, 0.0  ;;  %v618_v45 = vmax.f32 %v616_v43, 0.001 }
 0x390   :  { %v1121_v52 = vadd.f32 %v5029_v26, %v731_v50 }
 0x391   :  { %v1120_v54 = vadd.f32 %v730_v51, %v5034_v28  ;;  %4071 = vmatprep.mubr.msk.f32.mxu0 %vm648_vm2, %v730_v51  ;;  %4684 = vrcp.f32 %v618_v45 }
 0x392   :  { %4072 = vmatmul.mubr.msk.f32.vlgmr.msra.gmra.mrb[20].mxu0 %vm648_vm2, %v731_v50 }
 0x393   :  { %4445 = vmatpush3.bf16.msra.mxu0 %v5057_v36  ;;  %4093 = vmatprep.mubr.msk.f32.mxu0 %vm648_vm2, %v730_v51 }
 0x394   :  { %4447 = vmatprep.subr.bf16.mxu0 %v5090_v53 }
 0x397   :  { %4449 = vmatpush3.bf16.msra.mxu0 %v5090_v53 }
 0x398   :  { %4451 = vmatprep.subr.bf16.mxu0 %v5112_v60  ;;  %v4683_v47 = vpop.eup %4682 }
 0x39a   :  { %4094 = vmatmul.mubr.msk.f32.vlgmr.msra.gmra.mrb[22].mxu0 %vm648_vm2, %v731_v50  ;;  %v623_v50 = vmul.f32 %v4683_v47, %v615_v46 }
 0x39b   :  { %4453 = vmatpush3.bf16.msra.mxu0 %v5112_v60  ;;  %v4685_v49 = vpop.eup %4684 }
 0x39c   :  { %4455 = vmatprep.subr.bf16.mxu0 %v5144_v10  ;;  %v621_v51 = vmul.f32 %v4685_v49, %v614_v48  ;;  %4686 = vlog2.f32 %v623_v50 }
 0x39e   :  { %4688 = vlog2.f32 %v621_v51  ;;  %v3658_v51 = vld [vmem:[%s5538_s9 + $0x60] sm:$0xff] }
 0x39f   :  { %4457 = vmatpush3.bf16.msra.mxu0 %v5144_v10 }
 0x3a0   :  { %4475 = vmatprep.subr.bf16.mxu0 %v5069_v40 }
 0x465   :  { %v4073_v62 = vpop.f32.mrb[20].mxu0 }
 0x466   :  { %v821_v63 = vadd.f32 %v4073_v62, %v5119_v61  ;;  %v815_v0 = vpop.f32.mrb[21].mxu0 }
 0x467   :  { %v816_v1 = vadd.f32 %v5119_v61, %v815_v0 }
 0x468   :  { %v825_v5 = vmax.f32 %v821_v63, 0.0 }
 0x469   :  { %v824_v4 = vmax.f32 %v816_v1, 0.0 }
 0x46b   :  { %4082 = vmatprep.mubr.msk.f32.mxu1 %vm648_vm2, %v824_v4 }
 0x46c   :  { %4083 = vmatmul.mubr.msk.f32.vlgmr.msra.gmra.mrb[16].mxu1 %vm648_vm2, %v825_v5 }
 0x46d   :  { %4461 = vmatpush3.bf16.msra.mxu1 %v4458_v57  ;;  %4115 = vmatprep.mubr.msk.f32.mxu1 %vm648_vm2, %v1120_v54  ;;  %v5197_v54 = vld [vmem:[%s5548_s18] ss:$0 sm:$0xff] }
 0x46e   :  { %4463 = vmatprep.subr.bf16.mxu1 %v4462_v7  ;;  %v5202_v57 = vld [vmem:[%s5549_s16] ss:$0 sm:$0xff] }
 0x471   :  { %4465 = vmatpush3.bf16.msra.mxu1 %v4462_v7 }
 0x472   :  { %4467 = vmatprep.subr.bf16.mxu1 %v5023_v24 }
 0x474   :  { %4116 = vmatmul.mubr.msk.f32.vlgmr.msra.gmra.mrb[18].mxu1 %vm648_vm2, %v1121_v52  ;;  %v4687_v52 = vpop.eup %4686 }
 0x475   :  { %4469 = vmatpush3.bf16.msra.mxu1 %v5023_v24  ;;  %v4689_v55 = vpop.eup %4688  ;;  %v5204_v58 = vmul.f32 0.6931472, %v4687_v52  ;;  %v3659_v52 = vld [vmem:[%s5538_s9 + $0x68] sm:$0xff] }
 0x476   :  { %4471 = vmatprep.subr.bf16.mxu1 %v5047_v33  ;;  %v5207_v63 = vmul.f32 0.6931472, %v4689_v55  ;;  %v4538_v55 = vpack.c.bf16 %v3659_v52, %v3658_v51 }
 0x479   :  { %4473 = vmatpush3.bf16.msra.mxu1 %v5047_v33 }
 0x47a   :  { %4483 = vmatprep.subr.bf16.mxu1 %v5057_v36 }
 0x53f   :  { %v4084_v12 = vpop.f32.mrb[16].mxu1 }
 0x540   :  { %v915_v13 = vadd.f32 %v4084_v12, %v5152_v11  ;;  %v909_v14 = vpop.f32.mrb[17].mxu1 }
 0x541   :  { %v910_v15 = vadd.f32 %v5152_v11, %v909_v14  ;;  %v3636_v14 = vld [vmem:[%s5538_s9 + $0x50] sm:$0xff] }
 0x542   :  { %v919_v17 = vmax.f32 %v915_v13, 0.0 }
 0x543   :  { %v918_v16 = vmax.f32 %v910_v15, 0.0  ;;  %v3637_v15 = vld [vmem:[%s5538_s9 + $0x58] sm:$0xff] }
 0x545   :  { %4104 = vmatprep.mubr.msk.f32.mxu0 %vm648_vm2, %v918_v16 }
 0x546   :  { %4105 = vmatmul.mubr.msk.f32.vlgmr.msra.gmra.mrb[22].mxu0 %vm648_vm2, %v919_v17 }
 0x547   :  { %v4117_v6 = vpop.f32.mrb[18].mxu1  ;;  %4477 = vmatpush3.bf16.msra.mxu0 %v5069_v40 }
 0x548   :  { %v1213_v19 = vadd.f32 %v4117_v6, %v3615_v18  ;;  %v1207_v20 = vpop.f32.mrb[19].mxu1  ;;  %4479 = vmatprep.subr.bf16.mxu0 %v5074_v42 }
 0x549   :  { %v1208_v21 = vadd.f32 %v3615_v18, %v1207_v20  ;;  %v4502_v18 = vpack.c.bf16 %v3637_v15, %v3636_v14  ;;  %v3660_v14 = vld [vmem:[%s5538_s9 + $0x70] sm:$0xff]  ;;  %v3661_v15 = vld [vmem:[%s5538_s9 + $0x78] sm:$0xff] }
 0x54a   :  { %v1217_v22 = vmax.f32 %v1213_v19, 0.0  ;;  %v628_v19 = vlaneseq }
 0x54b   :  { %v1216_v23 = vmax.f32 %v1208_v21, 0.0  ;;  %4481 = vmatpush3.bf16.msra.mxu0 %v5074_v42 }
 0x54c   :  { %v5165_v25 = vadd.f32 %v5029_v26, %v1217_v22  ;;  %4499 = vmatprep.subr.bf16.mxu0 %v4498_v31 }
 0x54d   :  { %v5168_v27 = vadd.f32 %v1216_v23, %v5034_v28  ;;  %4126 = vmatprep.mubr.msk.f32.mxu1 %vm648_vm2, %v1216_v23 }
 0x54e   :  { %4127 = vmatmul.mubr.msk.f32.vlgmr.msra.gmra.mrb[20].mxu1 %vm648_vm2, %v1217_v22 }
 0x54f   :  { %4485 = vmatpush3.bf16.msra.mxu1 %v5057_v36  ;;  %4148 = vmatprep.mubr.msk.f32.mxu1 %vm648_vm2, %v1216_v23  ;;  %v629_v23 = vand.u32 127, %v628_v19 }
 0x550   :  { %4487 = vmatprep.subr.bf16.mxu1 %v5090_v53 }
 0x551   :  { %vm630_vm3 = vcmp.ge.s32.totalorder %v629_v23, 8  ;;  %vm631_vm4 = vcmp.lt.s32.totalorder %v629_v23, 12 }
 0x552   :  { %vm5233_vm5 = vmand %vm630_vm3, %vm631_vm4 }
 0x553   :  { %4489 = vmatpush3.bf16.msra.mxu1 %v5090_v53 }
 0x554   :  { %4491 = vmatprep.subr.bf16.mxu1 %v5112_v60 }
 0x556   :  { %4149 = vmatmul.mubr.msk.f32.vlgmr.msra.gmra.mrb[22].mxu1 %vm648_vm2, %v1217_v22 }
 0x557   :  { %4493 = vmatpush3.bf16.msra.mxu1 %v5112_v60 }
 0x558   :  { %4495 = vmatprep.subr.bf16.mxu1 %v5144_v10 }
 0x55b   :  { %4497 = vmatpush3.bf16.msra.mxu1 %v5144_v10 }
 0x55c   :  { %4515 = vmatprep.subr.bf16.mxu1 %v5069_v40 }
 0x619   :  { %v4106_v56 = vpop.f32.mrb[22].mxu0 }
 0x61a   :  { %v4658_v59 = vadd.f32 %v4106_v56, %v5197_v54  ;;  %v1082_v62 = vpop.f32.mrb[23].mxu0 }
 0x61b   :  { %v4659_v0 = vadd.f32 %v5197_v54, %v1082_v62 }
 0x61c   :  { %v1101_v1 = vadd.f32 %v4658_v59, %v5202_v57 }
 0x61d   :  { %v1100_v2 = vadd.f32 %v4659_v0, %v5202_v57 }
 0x61e   :  { %v1103_v3 = vadd.f32 %v1101_v1, %v5204_v58 }
 0x61f   :  { %v1102_v4 = vadd.f32 %v1100_v2, %v5207_v63 }
 0x620   :  { %v3609_v5 = vmul.f32 -1.442695, %v1103_v3 }
 0x621   :  { %v3608_v7 = vmul.f32 -1.442695, %v1102_v4  ;;  %v4128_v8 = vpop.f32.mrb[20].mxu1 }
 0x622   :  { %4690 = vpow2.f32 %v3609_v5  ;;  %v1307_v9 = vadd.f32 %v4128_v8, %v5119_v61  ;;  %v1301_v12 = vpop.f32.mrb[21].mxu1 }
 0x623   :  { %4692 = vpow2.f32 %v3608_v7  ;;  %v1302_v13 = vadd.f32 %v5119_v61, %v1301_v12 }
 0x624   :  { %v1311_v17 = vmax.f32 %v1307_v9, 0.0 }
 0x625   :  { %v1310_v16 = vmax.f32 %v1302_v13, 0.0 }
 0x627   :  { %4137 = vmatprep.mubr.msk.f32.mxu0 %vm648_vm2, %v1310_v16 }
 0x628   :  { %4138 = vmatmul.mubr.msk.f32.vlgmr.msra.gmra.mrb[24].mxu0 %vm648_vm2, %v1311_v17 }
 0x629   :  { %4501 = vmatpush3.bf16.msra.mxu0 %v4498_v31  ;;  %4170 = vmatprep.mubr.msk.f32.mxu0 %vm648_vm2, %v5168_v27 }
 0x62a   :  { %4503 = vmatprep.subr.bf16.mxu0 %v4502_v18 }
 0x62c   :  { %v4691_v6 = vpop.eup %4690 }
 0x62d   :  { %v4693_v20 = vpop.eup %4692  ;;  %v1111_v21 = vadd.f32 1.0, %v4691_v6  ;;  %4505 = vmatpush3.bf16.msra.mxu0 %v4502_v18  ;;  %v4542_v18 = vpack.c.bf16 %v3661_v15, %v3660_v14 }
 0x62e   :  { %v1110_v22 = vadd.f32 1.0, %v4693_v20  ;;  %4507 = vmatprep.subr.bf16.mxu0 %v5023_v24 }
 0x62f   :  { %4694 = vrcp.f32 %v1111_v21 }
 0x630   :  { %4696 = vrcp.f32 %v1110_v22  ;;  %4171 = vmatmul.mubr.msk.f32.vlgmr.msra.gmra.mrb[26].mxu0 %vm648_vm2, %v5165_v25 }
 0x631   :  { %4509 = vmatpush3.bf16.msra.mxu0 %v5023_v24 }
 0x632   :  { %4511 = vmatprep.subr.bf16.mxu0 %v5047_v33 }
 0x635   :  { %4513 = vmatpush3.bf16.msra.mxu0 %v5047_v33 }
 0x636   :  { %4523 = vmatprep.subr.bf16.mxu0 %v5057_v36 }
 0x639   :  { %v4695_v29 = vpop.eup %4694 }
 0x63a   :  { %v4697_v30 = vpop.eup %4696  ;;  %v1117_v31 = vsel %vm5233_vm5, %v4695_v29, %v1103_v3 }
 0x63b   :  { %1119 = vst [vmem:[%s5550_s19 + $0x8] sm:$0xff] %v1117_v31  ;;  %v1116_v25 = vsel %vm5233_vm5, %v4697_v30, %v1102_v4 }
 0x63c   :  { %1118 = vst [vmem:[%s5550_s19] sm:$0xff] %v1116_v25 }
 0x6fb   :  { %v4139_v32 = vpop.f32.mrb[24].mxu0 }
 0x6fc   :  { %v1401_v34 = vadd.f32 %v4139_v32, %v5152_v11  ;;  %v1395_v35 = vpop.f32.mrb[25].mxu0 }
 0x6fd   :  { %v1396_v37 = vadd.f32 %v5152_v11, %v1395_v35 }
 0x6fe   :  { %v1405_v39 = vmax.f32 %v1401_v34, 0.0 }
 0x6ff   :  { %v1404_v38 = vmax.f32 %v1396_v37, 0.0 }
 0x701   :  { %4159 = vmatprep.mubr.msk.f32.mxu1 %vm648_vm2, %v1404_v38  ;;  %v3663_v38 = vld [vmem:[%s5543_s10 + $0x3] ss:$0 sm:$0xff] }
 0x702   :  { %4160 = vmatmul.mubr.msk.f32.vlgmr.msra.gmra.mrb[22].mxu1 %vm648_vm2, %v1405_v39 }
 0x703   :  { %v4172_v43 = vpop.f32.mrb[26].mxu0  ;;  %4517 = vmatpush3.bf16.msra.mxu1 %v5069_v40 }
 0x704   :  { %v1700_v44 = vadd.f32 %v4172_v43, %v3639_v41  ;;  %v1694_v45 = vpop.f32.mrb[27].mxu0  ;;  %4519 = vmatprep.subr.bf16.mxu1 %v5074_v42 }
 0x705   :  { %v1695_v46 = vadd.f32 %v3639_v41, %v1694_v45 }
 0x706   :  { %v1704_v47 = vmax.f32 %v1700_v44, 0.0 }
 0x707   :  { %v1703_v48 = vmax.f32 %v1695_v46, 0.0  ;;  %4521 = vmatpush3.bf16.msra.mxu1 %v5074_v42 }
 0x708   :  { %v2095_v49 = vadd.f32 %v5029_v26, %v1704_v47  ;;  %4539 = vmatprep.subr.bf16.mxu1 %v4538_v55 }
 0x709   :  { %v2094_v50 = vadd.f32 %v1703_v48, %v5034_v28  ;;  %4181 = vmatprep.mubr.msk.f32.mxu0 %vm648_vm2, %v1703_v48 }
 0x70a   :  { %4182 = vmatmul.mubr.msk.f32.vlgmr.msra.gmra.mrb[28].mxu0 %vm648_vm2, %v1704_v47 }
 0x70b   :  { %4525 = vmatpush3.bf16.msra.mxu0 %v5057_v36  ;;  %4203 = vmatprep.mubr.msk.f32.mxu0 %vm648_vm2, %v1703_v48 }
 0x70c   :  { %4527 = vmatprep.subr.bf16.mxu0 %v5090_v53 }
 0x70f   :  { %4529 = vmatpush3.bf16.msra.mxu0 %v5090_v53 }
 0x710   :  { %4531 = vmatprep.subr.bf16.mxu0 %v5112_v60 }
 0x712   :  { %4204 = vmatmul.mubr.msk.f32.vlgmr.msra.gmra.mrb[30].mxu0 %vm648_vm2, %v1704_v47 }
 0x713   :  { %4533 = vmatpush3.bf16.msra.mxu0 %v5112_v60 }
 0x714   :  { %4535 = vmatprep.subr.bf16.mxu0 %v5144_v10 }
 0x717   :  { %4537 = vmatpush3.bf16.msra.mxu0 %v5144_v10 }
 0x718   :  { %4555 = vmatprep.subr.bf16.mxu0 %v5069_v40 }
 0x7d5   :  { %v4161_v56 = vpop.f32.mrb[22].mxu1 }
 0x7d6   :  { %v4660_v59 = vadd.f32 %v4161_v56, %v5197_v54  ;;  %v1568_v62 = vpop.f32.mrb[23].mxu1 }
 0x7d7   :  { %v4661_v0 = vadd.f32 %v5197_v54, %v1568_v62 }
 0x7d8   :  { %v1587_v1 = vadd.f32 %v4660_v59, %v5202_v57 }
 0x7d9   :  { %v1586_v2 = vadd.f32 %v4661_v0, %v5202_v57 }
 0x7da   :  { %v1589_v3 = vadd.f32 %v1587_v1, %v5204_v58 }
 0x7db   :  { %v1588_v4 = vadd.f32 %v1586_v2, %v5207_v63 }
 0x7dc   :  { %v3631_v5 = vmul.f32 -1.442695, %v1589_v3 }
 0x7dd   :  { %v3630_v7 = vmul.f32 -1.442695, %v1588_v4  ;;  %v4183_v8 = vpop.f32.mrb[28].mxu0 }
 0x7de   :  { %4698 = vpow2.f32 %v3631_v5  ;;  %v1794_v9 = vadd.f32 %v4183_v8, %v5119_v61  ;;  %v1788_v12 = vpop.f32.mrb[29].mxu0 }
 0x7df   :  { %4700 = vpow2.f32 %v3630_v7  ;;  %v1789_v13 = vadd.f32 %v5119_v61, %v1788_v12  ;;  %v3684_v12 = vld [vmem:[%s5538_s9 + $0x90] sm:$0xff] }
 0x7e0   :  { %v1798_v17 = vmax.f32 %v1794_v9, 0.0 }
 0x7e1   :  { %v1797_v16 = vmax.f32 %v1789_v13, 0.0  ;;  %v3685_v13 = vld [vmem:[%s5538_s9 + $0x98] sm:$0xff] }
 0x7e3   :  { %4192 = vmatprep.mubr.msk.f32.mxu1 %vm648_vm2, %v1797_v16  ;;  %v4582_v16 = vpack.c.bf16 %v3685_v13, %v3684_v12  ;;  %v3166_v12 = vld [vmem:[%s5539_s11] sm:$0xff]  ;;  %v3167_v13 = vld [vmem:[%s5539_s11 + $0x8] sm:$0xff] }
 0x7e4   :  { %4193 = vmatmul.mubr.msk.f32.vlgmr.msra.gmra.mrb[24].mxu1 %vm648_vm2, %v1798_v17 }
 0x7e5   :  { %4541 = vmatpush3.bf16.msra.mxu1 %v4538_v55  ;;  %4225 = vmatprep.mubr.msk.f32.mxu1 %vm648_vm2, %v2094_v50  ;;  %v3683_v50 = vld [vmem:[%s5538_s9 + $0x88] sm:$0xff] }
 0x7e6   :  { %4543 = vmatprep.subr.bf16.mxu1 %v4542_v18 }
 0x7e8   :  { %v4699_v6 = vpop.eup %4698 }
 0x7e9   :  { %v4701_v19 = vpop.eup %4700  ;;  %v1597_v20 = vadd.f32 1.0, %v4699_v6  ;;  %4545 = vmatpush3.bf16.msra.mxu1 %v4542_v18 }
 0x7ea   :  { %v1596_v21 = vadd.f32 1.0, %v4701_v19  ;;  %4547 = vmatprep.subr.bf16.mxu1 %v5023_v24 }
 0x7eb   :  { %4702 = vrcp.f32 %v1597_v20 }
 0x7ec   :  { %4704 = vrcp.f32 %v1596_v21  ;;  %4226 = vmatmul.mubr.msk.f32.vlgmr.msra.gmra.mrb[26].mxu1 %vm648_vm2, %v2095_v49  ;;  %v3682_v49 = vld [vmem:[%s5538_s9 + $0x80] sm:$0xff] }
 0x7ed   :  { %4549 = vmatpush3.bf16.msra.mxu1 %v5023_v24  ;;  %v4578_v51 = vpack.c.bf16 %v3683_v50, %v3682_v49 }
 0x7ee   :  { %4551 = vmatprep.subr.bf16.mxu1 %v5047_v33 }
 0x7f1   :  { %4553 = vmatpush3.bf16.msra.mxu1 %v5047_v33 }
 0x7f2   :  { %4563 = vmatprep.subr.bf16.mxu1 %v5057_v36 }
 0x7f5   :  { %v4703_v22 = vpop.eup %4702 }
 0x7f6   :  { %v4705_v23 = vpop.eup %4704  ;;  %v1603_v29 = vsel %vm5233_vm5, %v4703_v22, %v1589_v3 }
 0x7f7   :  { %3633 = vst [vmem:[%s5550_s19 + $0x18] sm:$0xff] %v1603_v29  ;;  %v1602_v30 = vsel %vm5233_vm5, %v4705_v23, %v1588_v4 }
 0x7f8   :  { %3632 = vst [vmem:[%s5550_s19 + $0x10] sm:$0xff] %v1602_v30 }
 0x8b7   :  { %v4194_v31 = vpop.f32.mrb[24].mxu1 }
 0x8b8   :  { %v1888_v25 = vadd.f32 %v4194_v31, %v5152_v11  ;;  %v1882_v32 = vpop.f32.mrb[25].mxu1 }
 0x8b9   :  { %v1883_v34 = vadd.f32 %v5152_v11, %v1882_v32  ;;  %v3687_v32 = vld [vmem:[%s5543_s10 + $0x4] ss:$0 sm:$0xff] }
 0x8ba   :  { %v1892_v37 = vmax.f32 %v1888_v25, 0.0 }
 0x8bb   :  { %v1891_v35 = vmax.f32 %v1883_v34, 0.0 }
 0x8bd   :  { %4214 = vmatprep.mubr.msk.f32.mxu0 %vm648_vm2, %v1891_v35 }
 0x8be   :  { %4215 = vmatmul.mubr.msk.f32.vlgmr.msra.gmra.mrb[30].mxu0 %vm648_vm2, %v1892_v37 }
 0x8bf   :  { %v4227_v39 = vpop.f32.mrb[26].mxu1  ;;  %4557 = vmatpush3.bf16.msra.mxu0 %v5069_v40 }
 0x8c0   :  { %v2187_v41 = vadd.f32 %v4227_v39, %v3663_v38  ;;  %v2181_v43 = vpop.f32.mrb[27].mxu1  ;;  %4559 = vmatprep.subr.bf16.mxu0 %v5074_v42 }
 0x8c1   :  { %v2182_v44 = vadd.f32 %v3663_v38, %v2181_v43 }
 0x8c2   :  { %v2191_v45 = vmax.f32 %v2187_v41, 0.0 }
 0x8c3   :  { %v2190_v46 = vmax.f32 %v2182_v44, 0.0  ;;  %4561 = vmatpush3.bf16.msra.mxu0 %v5074_v42 }
 0x8c4   :  { %v2582_v47 = vadd.f32 %v5029_v26, %v2191_v45  ;;  %4579 = vmatprep.subr.bf16.mxu0 %v4578_v51 }
 0x8c5   :  { %v2581_v48 = vadd.f32 %v2190_v46, %v5034_v28  ;;  %4236 = vmatprep.mubr.msk.f32.mxu1 %vm648_vm2, %v2190_v46 }
 0x8c6   :  { %4237 = vmatmul.mubr.msk.f32.vlgmr.msra.gmra.mrb[28].mxu1 %vm648_vm2, %v2191_v45 }
 0x8c7   :  { %4565 = vmatpush3.bf16.msra.mxu1 %v5057_v36  ;;  %4258 = vmatprep.mubr.msk.f32.mxu1 %vm648_vm2, %v2190_v46 }
 0x8c8   :  { %4567 = vmatprep.subr.bf16.mxu1 %v5090_v53 }
 0x8cb   :  { %4569 = vmatpush3.bf16.msra.mxu1 %v5090_v53 }
 0x8cc   :  { %4571 = vmatprep.subr.bf16.mxu1 %v5112_v60 }
 0x8ce   :  { %4259 = vmatmul.mubr.msk.f32.vlgmr.msra.gmra.mrb[30].mxu1 %vm648_vm2, %v2191_v45 }
 0x8cf   :  { %4573 = vmatpush3.bf16.msra.mxu1 %v5112_v60 }
 0x8d0   :  { %4575 = vmatprep.subr.bf16.mxu1 %v5144_v10 }
 0x8d3   :  { %4577 = vmatpush3.bf16.msra.mxu1 %v5144_v10 }
 0x8d4   :  { %4595 = vmatprep.subr.bf16.mxu1 %v5069_v40 }
 0x991   :  { %v4216_v52 = vpop.f32.mrb[30].mxu0 }
 0x992   :  { %v4662_v55 = vadd.f32 %v4216_v52, %v5197_v54  ;;  %v2055_v56 = vpop.f32.mrb[31].mxu0 }
 0x993   :  { %v4663_v59 = vadd.f32 %v5197_v54, %v2055_v56  ;;  %v3708_v56 = vld [vmem:[%s5538_s9 + $0xb0] sm:$0xff] }
 0x994   :  { %v2074_v62 = vadd.f32 %v4662_v55, %v5202_v57 }
 0x995   :  { %v2073_v0 = vadd.f32 %v4663_v59, %v5202_v57  ;;  %v3709_v59 = vld [vmem:[%s5538_s9 + $0xb8] sm:$0xff] }
 0x996   :  { %v2076_v1 = vadd.f32 %v2074_v62, %v5204_v58 }
 0x997   :  { %v2075_v2 = vadd.f32 %v2073_v0, %v5207_v63 }
 0x998   :  { %v3655_v3 = vmul.f32 -1.442695, %v2076_v1 }
 0x999   :  { %v3654_v4 = vmul.f32 -1.442695, %v2075_v2  ;;  %v4238_v5 = vpop.f32.mrb[28].mxu1 }
 0x99a   :  { %4706 = vpow2.f32 %v3655_v3  ;;  %v2281_v7 = vadd.f32 %v4238_v5, %v5119_v61  ;;  %v2275_v8 = vpop.f32.mrb[29].mxu1 }
 0x99b   :  { %4708 = vpow2.f32 %v3654_v4  ;;  %v2276_v9 = vadd.f32 %v5119_v61, %v2275_v8 }
 0x99c   :  { %v2285_v15 = vmax.f32 %v2281_v7, 0.0 }
 0x99d   :  { %v2284_v14 = vmax.f32 %v2276_v9, 0.0 }
 0x99f   :  { %4247 = vmatprep.mubr.msk.f32.mxu0 %vm648_vm2, %v2284_v14  ;;  %v4626_v14 = vpack.c.bf16 %v3167_v13, %v3166_v12  ;;  %v3442_v12 = vld [vmem:[%s5544_s15 + $0x10] sm:$0xff]  ;;  %v3443_v13 = vld [vmem:[%s5544_s15 + $0x18] sm:$0xff] }
 0x9a0   :  { %4248 = vmatmul.mubr.msk.f32.vlgmr.msra.gmra.mrb[32].mxu0 %vm648_vm2, %v2285_v15  ;;  %v3168_v15 = vld [vmem:[%s5539_s11 + $0x10] sm:$0xff] }
 0x9a1   :  { %4581 = vmatpush3.bf16.msra.mxu0 %v4578_v51  ;;  %4280 = vmatprep.mubr.msk.f32.mxu0 %vm648_vm2, %v2581_v48 }
 0x9a2   :  { %4583 = vmatprep.subr.bf16.mxu0 %v4582_v16 }
 0x9a4   :  { %v4707_v17 = vpop.eup %4706 }
 0x9a5   :  { %v4709_v18 = vpop.eup %4708  ;;  %v2084_v6 = vadd.f32 1.0, %v4707_v17  ;;  %4585 = vmatpush3.bf16.msra.mxu0 %v4582_v16  ;;  %v3169_v16 = vld [vmem:[%s5539_s11 + $0x18] sm:$0xff] }
 0x9a6   :  { %v2083_v19 = vadd.f32 1.0, %v4709_v18  ;;  %4587 = vmatprep.subr.bf16.mxu0 %v5023_v24  ;;  %v4630_v17 = vpack.c.bf16 %v3169_v16, %v3168_v15  ;;  %v3354_v18 = vld [vmem:[%s5541_s17] sm:$0xff] }
 0x9a7   :  { %4710 = vrcp.f32 %v2084_v6  ;;  %v3355_v6 = vld [vmem:[%s5541_s17 + $0x8] sm:$0xff]  ;;  %v3717_v15 = vld [vmem:[%s5546_s14] ss:$0 sm:$0xff] }
 0x9a8   :  { %4712 = vrcp.f32 %v2083_v19  ;;  %4281 = vmatmul.mubr.msk.f32.vlgmr.msra.gmra.mrb[34].mxu0 %vm648_vm2, %v2582_v47  ;;  %v4642_v19 = vpack.c.bf16 %v3355_v6, %v3354_v18 }
 0x9a9   :  { %4589 = vmatpush3.bf16.msra.mxu0 %v5023_v24 }
 0x9aa   :  { %4591 = vmatprep.subr.bf16.mxu0 %v5047_v33 }
 0x9ad   :  { %4593 = vmatpush3.bf16.msra.mxu0 %v5047_v33 }
 0x9ae   :  { %4603 = vmatprep.subr.bf16.mxu0 %v5057_v36 }
 0x9b1   :  { %v4711_v20 = vpop.eup %4710 }
 0x9b2   :  { %v4713_v21 = vpop.eup %4712  ;;  %v2090_v22 = vsel %vm5233_vm5, %v4711_v20, %v2076_v1  ;;  %v4622_v1 = vpack.c.bf16 %v3709_v59, %v3708_v56 }
 0x9b3   :  { %3657 = vst [vmem:[%s5550_s19 + $0x28] sm:$0xff] %v2090_v22  ;;  %v2089_v23 = vsel %vm5233_vm5, %v4713_v21, %v2075_v2 }
 0x9b4   :  { %3656 = vst [vmem:[%s5550_s19 + $0x20] sm:$0xff] %v2089_v23 }
 0xa73   :  { %v4249_v24 = vpop.f32.mrb[32].mxu0 }
 0xa74   :  { %v2375_v33 = vadd.f32 %v4249_v24, %v5152_v11  ;;  %v2369_v29 = vpop.f32.mrb[33].mxu0 }
 0xa75   :  { %v2370_v30 = vadd.f32 %v5152_v11, %v2369_v29  ;;  %v3711_v29 = vld [vmem:[%s5543_s10 + $0x5] ss:$0 sm:$0xff] }
 0xa76   :  { %v2379_v25 = vmax.f32 %v2375_v33, 0.0 }
 0xa77   :  { %v2378_v31 = vmax.f32 %v2370_v30, 0.0 }
 0xa79   :  { %4269 = vmatprep.mubr.msk.f32.mxu1 %vm648_vm2, %v2378_v31 }
 0xa7a   :  { %4270 = vmatmul.mubr.msk.f32.vlgmr.msra.gmra.mrb[30].mxu1 %vm648_vm2, %v2379_v25 }
 0xa7b   :  { %v4282_v34 = vpop.f32.mrb[34].mxu0  ;;  %4597 = vmatpush3.bf16.msra.mxu1 %v5069_v40 }
 0xa7c   :  { %v2674_v35 = vadd.f32 %v4282_v34, %v3687_v32  ;;  %v2668_v37 = vpop.f32.mrb[35].mxu0  ;;  %4599 = vmatprep.subr.bf16.mxu1 %v5074_v42  ;;  %v3356_v34 = vld [vmem:[%s5541_s17 + $0x10] sm:$0xff] }
 0xa7d   :  { %v2669_v38 = vadd.f32 %v3687_v32, %v2668_v37 }
 0xa7e   :  { %v2678_v39 = vmax.f32 %v2674_v35, 0.0 }
 0xa7f   :  { %v2677_v41 = vmax.f32 %v2669_v38, 0.0  ;;  %4601 = vmatpush3.bf16.msra.mxu1 %v5074_v42 }
 0xa80   :  { %v3069_v43 = vadd.f32 %v5029_v26, %v2678_v39  ;;  %v3706_v26 = vld [vmem:[%s5538_s9 + $0xa0] sm:$0xff] }
 0xa81   :  { %v3068_v44 = vadd.f32 %v2677_v41, %v5034_v28  ;;  %4291 = vmatprep.mubr.msk.f32.mxu0 %vm648_vm2, %v2677_v41  ;;  %v3707_v28 = vld [vmem:[%s5538_s9 + $0xa8] sm:$0xff] }
 0xa82   :  { %4292 = vmatmul.mubr.msk.f32.vlgmr.msra.gmra.mrb[36].mxu0 %vm648_vm2, %v2678_v39 }
 0xa83   :  { %4605 = vmatpush3.bf16.msra.mxu0 %v5057_v36  ;;  %4313 = vmatprep.mubr.msk.f32.mxu0 %vm648_vm2, %v2677_v41  ;;  %v4618_v36 = vpack.c.bf16 %v3707_v28, %v3706_v26  ;;  %v3261_v41 = vld [vmem:[%s5542_s13 + $0x8] sm:$0xff]  ;;  %v3263_v26 = vld [vmem:[%s5542_s13 + $0x18] sm:$0xff] }
 0xa84   :  { %4607 = vmatprep.subr.bf16.mxu0 %v5090_v53 }
 0xa85   :  { %4619 = vmatprep.subr.bf16.mxu1 %v4618_v36 }
 0xa87   :  { %4609 = vmatpush3.bf16.msra.mxu0 %v5090_v53 }
 0xa88   :  { %4611 = vmatprep.subr.bf16.mxu0 %v5112_v60 }
 0xa8a   :  { %4314 = vmatmul.mubr.msk.f32.vlgmr.msra.gmra.mrb[38].mxu0 %vm648_vm2, %v2678_v39  ;;  %v3260_v39 = vld [vmem:[%s5542_s13] sm:$0xff] }
 0xa8b   :  { %4613 = vmatpush3.bf16.msra.mxu0 %v5112_v60 }
 0xa8c   :  { %4615 = vmatprep.subr.bf16.mxu0 %v5144_v10 }
 0xa8f   :  { %4617 = vmatpush3.bf16.msra.mxu0 %v5144_v10 }
 0xb4d   :  { %v4271_v40 = vpop.f32.mrb[30].mxu1 }
 0xb4e   :  { %v4664_v42 = vadd.f32 %v4271_v40, %v5197_v54  ;;  %v2542_v53 = vpop.f32.mrb[31].mxu1  ;;  %v3441_v40 = vld [vmem:[%s5544_s15 + $0x8] sm:$0xff] }
 0xb4f   :  { %v4665_v60 = vadd.f32 %v5197_v54, %v2542_v53 }
 0xb50   :  { %v2561_v45 = vadd.f32 %v4664_v42, %v5202_v57 }
 0xb51   :  { %v2560_v10 = vadd.f32 %v4665_v60, %v5202_v57 }
 0xb52   :  { %v2563_v46 = vadd.f32 %v2561_v45, %v5204_v58 }
 0xb53   :  { %v2562_v47 = vadd.f32 %v2560_v10, %v5207_v63 }
 0xb54   :  { %v3679_v48 = vmul.f32 -1.442695, %v2563_v46 }
 0xb55   :  { %v3678_v49 = vmul.f32 -1.442695, %v2562_v47  ;;  %v4293_v50 = vpop.f32.mrb[36].mxu0 }
 0xb56   :  { %4714 = vpow2.f32 %v3679_v48  ;;  %v2768_v51 = vadd.f32 %v4293_v50, %v5119_v61  ;;  %v2762_v52 = vpop.f32.mrb[37].mxu0  ;;  %v3714_v50 = vld [vmem:[%s5545_s12] ss:$0 sm:$0xff] }
 0xb57   :  { %4716 = vpow2.f32 %v3678_v49  ;;  %v2763_v55 = vadd.f32 %v5119_v61, %v2762_v52 }
 0xb58   :  { %v2772_v0 = vmax.f32 %v2768_v51, 0.0 }
 0xb59   :  { %v2771_v62 = vmax.f32 %v2763_v55, 0.0 }
 0xb5b   :  { %4302 = vmatprep.mubr.msk.f32.mxu1 %vm648_vm2, %v2771_v62 }
 0xb5c   :  { %4303 = vmatmul.mubr.msk.f32.vlgmr.msra.gmra.mrb[32].mxu1 %vm648_vm2, %v2772_v0 }
 0xb5d   :  { %4621 = vmatpush3.bf16.msra.mxu1 %v4618_v36  ;;  %4335 = vmatprep.mubr.msk.f32.mxu1 %vm648_vm2, %v3068_v44  ;;  %v3262_v44 = vld [vmem:[%s5542_s13 + $0x10] sm:$0xff]  ;;  %v3440_v36 = vld [vmem:[%s5544_s15] sm:$0xff] }
 0xb5e   :  { %4623 = vmatprep.subr.bf16.mxu1 %v4622_v1  ;;  %v4638_v28 = vpack.c.bf16 %v3263_v26, %v3262_v44  ;;  %v4650_v42 = vpack.c.bf16 %v3441_v40, %v3440_v36 }
 0xb60   :  { %v4715_v61 = vpop.eup %4714 }
 0xb61   :  { %v4717_v2 = vpop.eup %4716  ;;  %v2571_v3 = vadd.f32 1.0, %v4715_v61  ;;  %4625 = vmatpush3.bf16.msra.mxu1 %v4622_v1 }
 0xb62   :  { %v2570_v4 = vadd.f32 1.0, %v4717_v2  ;;  %4627 = vmatprep.subr.bf16.mxu1 %v4626_v14 }
 0xb63   :  { %4718 = vrcp.f32 %v2571_v3 }
 0xb64   :  { %4720 = vrcp.f32 %v2570_v4  ;;  %4336 = vmatmul.mubr.msk.f32.vlgmr.msra.gmra.mrb[34].mxu1 %vm648_vm2, %v3069_v43  ;;  %v4634_v43 = vpack.c.bf16 %v3261_v41, %v3260_v39 }
 0xb65   :  { %4629 = vmatpush3.bf16.msra.mxu1 %v4626_v14  ;;  %v4654_v14 = vpack.c.bf16 %v3443_v13, %v3442_v12 }
 0xb66   :  { %4631 = vmatprep.subr.bf16.mxu1 %v4630_v17  ;;  %4635 = vmatprep.subr.bf16.mxu0 %v4634_v43 }
 0xb69   :  { %4633 = vmatpush3.bf16.msra.mxu1 %v4630_v17 }
 0xb6a   :  { %4643 = vmatprep.subr.bf16.mxu1 %v4642_v19 }
 0xb6d   :  { %v4719_v5 = vpop.eup %4718 }
 0xb6e   :  { %v4721_v7 = vpop.eup %4720  ;;  %v2577_v8 = vsel %vm5233_vm5, %v4719_v5, %v2563_v46 }
 0xb6f   :  { %3681 = vst [vmem:[%s5550_s19 + $0x38] sm:$0xff] %v2577_v8  ;;  %v2576_v9 = vsel %vm5233_vm5, %v4721_v7, %v2562_v47 }
 0xb70   :  { %3680 = vst [vmem:[%s5550_s19 + $0x30] sm:$0xff] %v2576_v9 }
 0xc2f   :  { %v4304_v20 = vpop.f32.mrb[32].mxu1 }
 0xc30   :  { %v2862_v21 = vadd.f32 %v4304_v20, %v5152_v11  ;;  %v2856_v22 = vpop.f32.mrb[33].mxu1 }
 0xc31   :  { %v2857_v23 = vadd.f32 %v5152_v11, %v2856_v22  ;;  %v3357_v11 = vld [vmem:[%s5541_s17 + $0x18] sm:$0xff] }
 0xc32   :  { %v2866_v33 = vmax.f32 %v2862_v21, 0.0  ;;  %v4646_v38 = vpack.c.bf16 %v3357_v11, %v3356_v34 }
 0xc33   :  { %v2865_v24 = vmax.f32 %v2857_v23, 0.0 }
 0xc35   :  { %4324 = vmatprep.mubr.msk.f32.mxu0 %vm648_vm2, %v2865_v24 }
 0xc36   :  { %4325 = vmatmul.mubr.msk.f32.vlgmr.msra.gmra.mrb[38].mxu0 %vm648_vm2, %v2866_v33 }
 0xc37   :  { %v4337_v30 = vpop.f32.mrb[34].mxu1  ;;  %4637 = vmatpush3.bf16.msra.mxu0 %v4634_v43 }
 0xc38   :  { %v3161_v31 = vadd.f32 %v4337_v30, %v3711_v29  ;;  %v3155_v25 = vpop.f32.mrb[35].mxu1  ;;  %4639 = vmatprep.subr.bf16.mxu0 %v4638_v28 }
 0xc39   :  { %v3156_v32 = vadd.f32 %v3711_v29, %v3155_v25 }
 0xc3a   :  { %v3165_v37 = vmax.f32 %v3161_v31, 0.0 }
 0xc3b   :  { %v3164_v35 = vmax.f32 %v3156_v32, 0.0  ;;  %4641 = vmatpush3.bf16.msra.mxu0 %v4638_v28 }
 0xc3d   :  { %4346 = vmatprep.mubr.msk.f32.mxu1 %vm648_vm2, %v3164_v35 }
 0xc3e   :  { %4347 = vmatmul.mubr.msk.f32.vlgmr.msra.gmra.mrb[36].mxu1 %vm648_vm2, %v3165_v37 }
 0xc3f   :  { %4645 = vmatpush3.bf16.msra.mxu1 %v4642_v19  ;;  %4368 = vmatprep.mubr.msk.f32.mxu1 %vm648_vm2, %v3164_v35 }
 0xc40   :  { %4647 = vmatprep.subr.bf16.mxu1 %v4646_v38 }
 0xc43   :  { %4649 = vmatpush3.bf16.msra.mxu1 %v4646_v38 }
 0xc44   :  { %4651 = vmatprep.subr.bf16.mxu1 %v4650_v42 }
 0xc46   :  { %4369 = vmatmul.mubr.msk.f32.vlgmr.msra.gmra.mrb[38].mxu1 %vm648_vm2, %v3165_v37 }
 0xc47   :  { %4653 = vmatpush3.bf16.msra.mxu1 %v4650_v42 }
 0xc48   :  { %4655 = vmatprep.subr.bf16.mxu1 %v4654_v14 }
 0xc4b   :  { %4657 = vmatpush3.bf16.msra.mxu1 %v4654_v14 }
 0xd09   :  { %v4326_v53 = vpop.f32.mrb[38].mxu0 }
 0xd0a   :  { %v4666_v60 = vadd.f32 %v4326_v53, %v5197_v54  ;;  %v3029_v45 = vpop.f32.mrb[39].mxu0 }
 0xd0b   :  { %v4667_v10 = vadd.f32 %v5197_v54, %v3029_v45 }
 0xd0c   :  { %v3048_v46 = vadd.f32 %v4666_v60, %v5202_v57 }
 0xd0d   :  { %v3047_v47 = vadd.f32 %v4667_v10, %v5202_v57 }
 0xd0e   :  { %v3050_v48 = vadd.f32 %v3048_v46, %v5204_v58 }
 0xd0f   :  { %v3049_v49 = vadd.f32 %v3047_v47, %v5207_v63 }
 0xd10   :  { %v3703_v51 = vmul.f32 -1.442695, %v3050_v48 }
 0xd11   :  { %v3702_v52 = vmul.f32 -1.442695, %v3049_v49  ;;  %v4348_v55 = vpop.f32.mrb[36].mxu1 }
 0xd12   :  { %4722 = vpow2.f32 %v3703_v51  ;;  %v3255_v56 = vadd.f32 %v4348_v55, %v3714_v50  ;;  %v3249_v59 = vpop.f32.mrb[37].mxu1 }
 0xd13   :  { %4724 = vpow2.f32 %v3702_v52  ;;  %v3250_v62 = vadd.f32 %v3714_v50, %v3249_v59 }
 0xd14   :  { %v3259_v1 = vmax.f32 %v3255_v56, 0.0 }
 0xd15   :  { %v3258_v0 = vmax.f32 %v3250_v62, 0.0 }
 0xd17   :  { %4357 = vmatprep.mubr.msk.f32.mxu0 %vm648_vm2, %v3258_v0 }
 0xd18   :  { %4358 = vmatmul.mubr.msk.f32.vlgmr.msra.gmra.mrb[40].mxu0 %vm648_vm2, %v3259_v1 }
 0xd1c   :  { %v4723_v61 = vpop.eup %4722 }
 0xd1d   :  { %v4725_v2 = vpop.eup %4724  ;;  %v3058_v3 = vadd.f32 1.0, %v4723_v61 }
 0xd1e   :  { %v3057_v4 = vadd.f32 1.0, %v4725_v2 }
 0xd1f   :  { %4726 = vrcp.f32 %v3058_v3 }
 0xd20   :  { %4728 = vrcp.f32 %v3057_v4 }
 0xd29   :  { %v4727_v5 = vpop.eup %4726 }
 0xd2a   :  { %v4729_v7 = vpop.eup %4728  ;;  %v3064_v8 = vsel %vm5233_vm5, %v4727_v5, %v3050_v48 }
 0xd2b   :  { %3705 = vst [vmem:[%s5550_s19 + $0x48] sm:$0xff] %v3064_v8  ;;  %v3063_v9 = vsel %vm5233_vm5, %v4729_v7, %v3049_v49 }
 0xd2c   :  { %3704 = vst [vmem:[%s5550_s19 + $0x40] sm:$0xff] %v3063_v9 }
 0xdeb   :  { %v4359_v16 = vpop.f32.mrb[40].mxu0 }
 0xdec   :  { %v3349_v17 = vadd.f32 %v4359_v16, %v3717_v15  ;;  %v3343_v18 = vpop.f32.mrb[41].mxu0 }
 0xded   :  { %v3344_v6 = vadd.f32 %v3717_v15, %v3343_v18 }
 0xdee   :  { %v3353_v20 = vmax.f32 %v3349_v17, 0.0 }
 0xdef   :  { %v3352_v19 = vmax.f32 %v3344_v6, 0.0 }
 0xdf1   :  { %4379 = vmatprep.mubr.msk.f32.mxu1 %vm648_vm2, %v3352_v19 }
 0xdf2   :  { %4380 = vmatmul.mubr.msk.f32.vlgmr.msra.gmra.mrb[38].mxu1 %vm648_vm2, %v3353_v20 }
 0xec5   :  { %v4381_v21 = vpop.f32.mrb[38].mxu1 }
 0xec6   :  { %v4668_v22 = vadd.f32 %v4381_v21, %v5197_v54  ;;  %v3516_v23 = vpop.f32.mrb[39].mxu1 }
 0xec7   :  { %v4669_v24 = vadd.f32 %v5197_v54, %v3516_v23 }
 0xec8   :  { %v3535_v33 = vadd.f32 %v4668_v22, %v5202_v57 }
 0xec9   :  { %v3534_v29 = vadd.f32 %v4669_v24, %v5202_v57 }
 0xeca   :  { %v3537_v30 = vadd.f32 %v3535_v33, %v5204_v58 }
 0xecb   :  { %v3536_v31 = vadd.f32 %v3534_v29, %v5207_v63 }
 0xecc   :  { %v3727_v25 = vmul.f32 -1.442695, %v3537_v30 }
 0xecd   :  { %v3726_v32 = vmul.f32 -1.442695, %v3536_v31 }
 0xece   :  { %4730 = vpow2.f32 %v3727_v25 }
 0xecf   :  { %4732 = vpow2.f32 %v3726_v32 }
 0xed8   :  { %v4731_v34 = vpop.eup %4730 }
 0xed9   :  { %v4733_v11 = vpop.eup %4732  ;;  %v3545_v35 = vadd.f32 1.0, %v4731_v34 }
 0xeda   :  { %v3544_v37 = vadd.f32 1.0, %v4733_v11 }
 0xedb   :  { %4734 = vrcp.f32 %v3545_v35 }
 0xedc   :  { %4736 = vrcp.f32 %v3544_v37 }
 0xee5   :  { %v4735_v38 = vpop.eup %4734 }
 0xee6   :  { %v4737_v54 = vpop.eup %4736  ;;  %v3551_v39 = vsel %vm5233_vm5, %v4735_v38, %v3537_v30 }
 0xee7   :  { %3729 = vst [vmem:[%s5550_s19 + $0x58] sm:$0xff] %v3551_v39  ;;  %v3550_v57 = vsel %vm5233_vm5, %v4737_v54, %v3536_v31 }
 0xee8   :  { %3728 = vst [vmem:[%s5550_s19 + $0x50] sm:$0xff] %v3550_v57 }

</bundles_post_ra>
